<compile_context>
chip_gen: v5e
topology: v5e:2x2
jax: 0.10.0
libtpu: 0.0.40
codegen_flags: <defaults>
</compile_context>

<pallas_src>
import jax
import jax.numpy as jnp
from jax.experimental import pallas as pl
from jax.experimental.pallas import tpu as pltpu

EPS = 1e-5


# ---------------------------------------------------------------------------
# Stage 1: depthwise 3x3 conv (stride 1, pad 1, dilation 1) + per-image
#          partial BN statistics (sum / sum-of-squares).
# ---------------------------------------------------------------------------
def _depthwise_kernel(x_ref, w_ref, y_ref, sum_ref, ssq_ref, xp_ref):
    # x_ref : (1, H, W, C) f32 input image (no HBM pre-padding)
    # w_ref : (3, 3, C)    depthwise filters
    # y_ref : (1, H, W, C) conv output (bf16 or f32)
    # sum_ref / ssq_ref : (1, 1, C) per-image partial stats (no accumulation,
    #                     so the grid axis stays "parallel")
    # xp_ref: VMEM scratch (H+2, W+2, C) f32 - zero-rimmed padded copy
    H, W, C = x_ref.shape[1], x_ref.shape[2], x_ref.shape[3]

    # Build the 1-px halo in VMEM (saves a full HBM pad pass).  The interior
    # is fully overwritten every grid step, so the rim stays zero.
    xp_ref[...] = jnp.zeros_like(xp_ref)
    xp_ref[1:H + 1, 1:W + 1, :] = x_ref[0]
    xp = xp_ref[...]                                   # (H+2, W+2, C)
    w = w_ref[...]                                     # (3, 3, C)

    # Hoist the 3 kw (sublane-axis) shifted slices out of the tap loop; the
    # kh offsets run along the free leading axis.
    xs = [xp[:, kw:kw + W, :] for kw in range(3)]      # each (H+2, W, C)

    acc = jnp.zeros((H, W, C), jnp.float32)
    for kw in range(3):
        for kh in range(3):
            acc += xs[kw][kh:kh + H] * w[kh, kw]

    # NOTE: depthwise conv bias intentionally omitted (cancels in batch BN).
    y_ref[0] = acc.astype(y_ref.dtype)

    sum_ref[...] = jnp.sum(acc, axis=(0, 1))[None, None, :]
    ssq_ref[...] = jnp.sum(acc * acc, axis=(0, 1))[None, None, :]


# ---------------------------------------------------------------------------
# Stage 2: BN(depthwise) + ReLU + 1x1 conv (lane-packed, block-diag weight)
#          + per-block partial BN statistics of the pointwise output.
# ---------------------------------------------------------------------------
def _pointwise_kernel(x_ref, s_ref, b_ref, wb_ref, y_ref, sum_ref, ssq_ref):
    # x_ref : (tmP, Lp*C)       packed depthwise output (bf16/f32)
    # s_ref : (1, Lp*C)         BN scale (tiled Lp times)
    # b_ref : (1, Lp*C)         BN shift (tiled Lp times)
    # wb_ref: (Lp*C, Lp*Cout)   block-diagonal kron(I_Lp, Wp)
    # y_ref : (tmP, Lp*Cout)    packed pointwise output (bf16/f32)
    # sum_ref / ssq_ref: (1, 1, Lp*Cout) per-block partial stats
    h = jnp.maximum(x_ref[...].astype(jnp.float32) * s_ref[...] + b_ref[...],
                    0.0)
    y = jnp.dot(h, wb_ref[...], preferred_element_type=jnp.float32)
    y_ref[...] = y.astype(y_ref.dtype)
    sum_ref[...] = jnp.sum(y, axis=0)[None, None, :]
    ssq_ref[...] = jnp.sum(y * y, axis=0)[None, None, :]


# ---------------------------------------------------------------------------
# Stage 3: BN(pointwise) + ReLU finalize (lane-dense elementwise pass).
# ---------------------------------------------------------------------------
def _bn_relu_kernel(x_ref, s_ref, b_ref, o_ref):
    o_ref[...] = jnp.maximum(
        x_ref[...].astype(jnp.float32) * s_ref[...] + b_ref[...], 0.0)


# ---------------------------------------------------------------------------
# Helpers
# ---------------------------------------------------------------------------
def _pack_factor(c, rows):
    """Lane-packing factor: fold Lp rows into lanes so last dim = Lp*c ~ 128."""
    if c >= 128 or 128 % c != 0:
        return 1
    lp = 128 // c
    while lp > 1 and rows % lp != 0:
        lp //= 2
    return max(lp, 1)


def _pick_row_block(rows, cap):
    """Largest divisor of `rows` <= cap that is a multiple of 8 (or == rows)."""
    cap = max(1, min(rows, cap))
    for d in range(cap, 0, -1):
        if rows % d == 0 and (d % 8 == 0 or d == rows):
            return d
    return rows


def _bn_scale_shift(sum_c, ssq_c, count, gamma, beta):
    mean = sum_c / count
    var = jnp.maximum(ssq_c / count - mean * mean, 0.0)
    scale = gamma * jax.lax.rsqrt(var + EPS)
    return scale, beta - mean * scale


# ---------------------------------------------------------------------------
# Wrapper (NCHW in / NCHW out, matching the PyTorch module interface)
# ---------------------------------------------------------------------------
def depthwise_conv_block(x_nchw, params, *, row_block=8192,
                         interm_dtype=jnp.bfloat16):
    N, C, H, W = x_nchw.shape
    x = jnp.transpose(x_nchw, (0, 2, 3, 1)).astype(jnp.float32)     # -> NHWC

    wd = params["w_depth"]                       # (3, 3, C)
    wp = params["w_point"]                       # (C, Cout)
    Cout = wp.shape[1]
    cnt = jnp.float32(N * H * W)
    vmem = 32 * 1024 * 1024                      # safe on v5e/v6e/v7x

    # ---- stage 1: depthwise conv + per-image partial stats -----------------
    dw, dsum, dssq = pl.pallas_call(
        _depthwise_kernel,
        out_shape=(
            jax.ShapeDtypeStruct((N, H, W, C), interm_dtype),
            jax.ShapeDtypeStruct((N, 1, C), jnp.float32),
            jax.ShapeDtypeStruct((N, 1, C), jnp.float32),
        ),
        grid=(N,),
        in_specs=[
            pl.BlockSpec((1, H, W, C), lambda n: (n, 0, 0, 0)),
            pl.BlockSpec((3, 3, C), lambda n: (0, 0, 0)),
        ],
        out_specs=(
            pl.BlockSpec((1, H, W, C), lambda n: (n, 0, 0, 0)),
            pl.BlockSpec((1, 1, C), lambda n: (n, 0, 0)),
            pl.BlockSpec((1, 1, C), lambda n: (n, 0, 0)),
        ),
        scratch_shapes=[pltpu.VMEM((H + 2, W + 2, C), jnp.float32)],
        compiler_params=pltpu.CompilerParams(
            dimension_semantics=("parallel",), vmem_limit_bytes=vmem),
    )(x, wd)

    scale_d, shift_d = _bn_scale_shift(
        jnp.sum(dsum, axis=(0, 1)), jnp.sum(dssq, axis=(0, 1)), cnt,
        params["bn_d_gamma"], params["bn_d_beta"])

    # ---- lane-dense packing for stages 2/3 ---------------------------------
    R = N * H * W
    Lp = _pack_factor(C, R)
    RP = R // Lp
    dw_p = dw.reshape(RP, Lp * C)                # contiguous -> free reshape
    wb = jnp.kron(jnp.eye(Lp, dtype=jnp.float32), wp.astype(jnp.float32))
    sd_t = jnp.tile(scale_d, Lp)[None, :]
    bd_t = jnp.tile(shift_d, Lp)[None, :]

    tmP = _pick_row_block(RP, max(1, row_block // Lp))
    grid2 = RP // tmP

    # ---- stage 2: BN + ReLU + 1x1 conv + partial stats ---------------------
    pw, psum, pssq = pl.pallas_call(
        _pointwise_kernel,
        out_shape=(
            jax.ShapeDtypeStruct((RP, Lp * Cout), interm_dtype),
            jax.ShapeDtypeStruct((grid2, 1, Lp * Cout), jnp.float32),
            jax.ShapeDtypeStruct((grid2, 1, Lp * Cout), jnp.float32),
        ),
        grid=(grid2,),
        in_specs=[
            pl.BlockSpec((tmP, Lp * C), lambda i: (i, 0)),
            pl.BlockSpec((1, Lp * C), lambda i: (0, 0)),
            pl.BlockSpec((1, Lp * C), lambda i: (0, 0)),
            pl.BlockSpec((Lp * C, Lp * Cout), lambda i: (0, 0)),
        ],
        out_specs=(
            pl.BlockSpec((tmP, Lp * Cout), lambda i: (i, 0)),
            pl.BlockSpec((1, 1, Lp * Cout), lambda i: (i, 0, 0)),
            pl.BlockSpec((1, 1, Lp * Cout), lambda i: (i, 0, 0)),
        ),
        compiler_params=pltpu.CompilerParams(
            dimension_semantics=("parallel",), vmem_limit_bytes=vmem),
    )(dw_p, sd_t, bd_t, wb)

    sum_p = jnp.sum(psum, axis=(0, 1)).reshape(Lp, Cout).sum(axis=0)
    ssq_p = jnp.sum(pssq, axis=(0, 1)).reshape(Lp, Cout).sum(axis=0)
    scale_p, shift_p = _bn_scale_shift(sum_p, ssq_p, cnt,
                                       params["bn_p_gamma"],
                                       params["bn_p_beta"])
    sp_t = jnp.tile(scale_p, Lp)[None, :]
    bp_t = jnp.tile(shift_p, Lp)[None, :]

    # ---- stage 3: BN + ReLU finalize ---------------------------------------
    out_p = pl.pallas_call(
        _bn_relu_kernel,
        out_shape=jax.ShapeDtypeStruct((RP, Lp * Cout), jnp.float32),
        grid=(grid2,),
        in_specs=[
            pl.BlockSpec((tmP, Lp * Cout), lambda i: (i, 0)),
            pl.BlockSpec((1, Lp * Cout), lambda i: (0, 0)),
            pl.BlockSpec((1, Lp * Cout), lambda i: (0, 0)),
        ],
        out_specs=pl.BlockSpec((tmP, Lp * Cout), lambda i: (i, 0)),
        compiler_params=pltpu.CompilerParams(
            dimension_semantics=("parallel",), vmem_limit_bytes=vmem),
    )(pw, sp_t, bp_t)

    out = out_p.reshape(N, H, W, Cout)
    return jnp.transpose(out, (0, 3, 1, 2))                       # -> NCHW


# ---------------------------------------------------------------------------
# Deterministic parameter init (mirrors the module; conv biases are kept in
# the dict / reference even though the kernel provably does not need them).
# ---------------------------------------------------------------------------
def init_params(key, cin, cout):
    ks = jax.random.split(key, 8)
    return dict(
        w_depth=jax.random.normal(ks[0], (3, 3, cin), jnp.float32) * 0.1,
        b_depth=jax.random.normal(ks[1], (cin,), jnp.float32) * 0.1,
        bn_d_gamma=1.0 + 0.1 * jax.random.normal(ks[2], (cin,), jnp.float32),
        bn_d_beta=0.1 * jax.random.normal(ks[3], (cin,), jnp.float32),
        w_point=jax.random.normal(ks[4], (cin, cout), jnp.float32) * 0.1,
        b_point=jax.random.normal(ks[5], (cout,), jnp.float32) * 0.1,
        bn_p_gamma=1.0 + 0.1 * jax.random.normal(ks[6], (cout,), jnp.float32),
        bn_p_beta=0.1 * jax.random.normal(ks[7], (cout,), jnp.float32),
    )


# ---------------------------------------------------------------------------
# Pure-JAX reference (f32 everywhere, biases included, training-mode BN).
# ---------------------------------------------------------------------------
def _reference(x_nchw, p):
    x = jnp.transpose(x_nchw, (0, 2, 3, 1)).astype(jnp.float32)   # NHWC
    cin = x.shape[-1]
    wd = p["w_depth"].reshape(3, 3, 1, cin)                       # HWIO, grouped
    y = jax.lax.conv_general_dilated(
        x, wd, window_strides=(1, 1), padding=((1, 1), (1, 1)),
        dimension_numbers=("NHWC", "HWIO", "NHWC"),
        feature_group_count=cin) + p["b_depth"]

    def bn_relu(v, gamma, beta):
        m = jnp.mean(v, axis=(0, 1, 2))
        var = jnp.mean((v - m) ** 2, axis=(0, 1, 2))
        return jnp.maximum(gamma * (v - m) * jax.lax.rsqrt(var + EPS) + beta,
                           0.0)

    y = bn_relu(y, p["bn_d_gamma"], p["bn_d_beta"])
    y = jnp.einsum("nhwc,cd->nhwd", y, p["w_point"]) + p["b_point"]
    y = bn_relu(y, p["bn_p_gamma"], p["bn_p_beta"])
    return jnp.transpose(y, (0, 3, 1, 2))


if __name__ == "__main__":
    key = jax.random.PRNGKey(0)
    kx, kp = jax.random.split(key)

    N, Cin, Cout, H, W = 2, 8, 16, 16, 16
    x = jax.random.normal(kx, (N, Cin, H, W), jnp.float32)
    params = init_params(kp, Cin, Cout)

    ref = jax.block_until_ready(_reference(x, params))

    # f32-intermediate path, small row blocks (multi-step grid) -> tight check
    out_f32 = jax.block_until_ready(
        depthwise_conv_block(x, params, interm_dtype=jnp.float32,
                             row_block=128))
    assert out_f32.shape == (N, Cout, H, W)
    err_f32 = float(jnp.max(jnp.abs(out_f32 - ref)))
    assert err_f32 < 3e-2, f"f32-path mismatch vs reference: {err_f32}"

    # optimized default path (bf16 intermediates, large lane-dense blocks);
    # looser tolerance accounts for bf16 storage of the two intermediates.
    out = jax.block_until_ready(depthwise_conv_block(x, params))
    assert out.shape == (N, Cout, H, W)
    err = float(jnp.max(jnp.abs(out - ref)))
    assert err < 1e-1, f"bf16-path mismatch vs reference: {err}"

    print("KERNEL_OK")
</pallas_src>

<mosaic_0001>
module attributes {stable_mosaic.version = 11 : i64} {
  func.func @_depthwise_kernel(%arg0: i32, %arg1: memref<1x16x16x8xf32, #tpu.memory_space<vmem>>, %arg2: memref<3x3x8xf32, #tpu.memory_space<vmem>>, %arg3: memref<1x16x16x8xf32, #tpu.memory_space<vmem>>, %arg4: memref<1x1x8xf32, #tpu.memory_space<vmem>>, %arg5: memref<1x1x8xf32, #tpu.memory_space<vmem>>, %arg6: memref<18x18x8xf32, #tpu.memory_space<vmem>>) attributes {dimension_semantics = [#tpu.dimension_semantics<parallel>], iteration_bounds = array<i64: 2>, scalar_prefetch = 0 : i64, scratch_operands = 1 : i64, tpu.core_type = #tpu.core_type<tc>, window_params = [{transform_indices = @transform_0, window_bounds = array<i64: 1, 16, 16, 8>}, {pipeline_mode = #tpu.pipeline_mode<synchronous>, transform_indices = @transform_1, window_bounds = array<i64: 3, 3, 8>}, {transform_indices = @transform_2, window_bounds = array<i64: 1, 16, 16, 8>}, {transform_indices = @transform_3, window_bounds = array<i64: 1, 1, 8>}, {transform_indices = @transform_4, window_bounds = array<i64: 1, 1, 8>}]} {
    %cst = arith.constant 0.000000e+00 : f32
    %0 = vector.broadcast %cst : f32 to vector<18x18x8xf32>
    %c0 = arith.constant 0 : index
    %c0_0 = arith.constant 0 : index
    %c0_1 = arith.constant 0 : index
    %1 = vector.load %arg6[%c0, %c0_0, %c0_1] : memref<18x18x8xf32, #tpu.memory_space<vmem>>, vector<18x18x8xf32>
    tpu.vector_store %arg6[%c0, %c0_0, %c0_1], %0 {strides = array<i32>} : memref<18x18x8xf32, #tpu.memory_space<vmem>>, vector<18x18x8xf32>,
    %c0_2 = arith.constant 0 : index
    %c0_3 = arith.constant 0 : index
    %c0_4 = arith.constant 0 : index
    %c0_5 = arith.constant 0 : index
    %2 = vector.load %arg1[%c0_2, %c0_3, %c0_4, %c0_5] : memref<1x16x16x8xf32, #tpu.memory_space<vmem>>, vector<1x16x16x8xf32>
    %3 = vector.shape_cast %2 : vector<1x16x16x8xf32> to vector<16x16x8xf32>
    %c1 = arith.constant 1 : index
    %c1_6 = arith.constant 1 : index
    %c0_7 = arith.constant 0 : index
    %4 = vector.load %arg6[%c1, %c1_6, %c0_7] : memref<18x18x8xf32, #tpu.memory_space<vmem>>, vector<16x16x8xf32>
    tpu.vector_store %arg6[%c1, %c1_6, %c0_7], %3 {strides = array<i32>} : memref<18x18x8xf32, #tpu.memory_space<vmem>>, vector<16x16x8xf32>,
    %c0_8 = arith.constant 0 : index
    %c0_9 = arith.constant 0 : index
    %c0_10 = arith.constant 0 : index
    %5 = vector.load %arg6[%c0_8, %c0_9, %c0_10] : memref<18x18x8xf32, #tpu.memory_space<vmem>>, vector<18x18x8xf32>
    %c0_11 = arith.constant 0 : index
    %c0_12 = arith.constant 0 : index
    %c0_13 = arith.constant 0 : index
    %6 = vector.load %arg2[%c0_11, %c0_12, %c0_13] : memref<3x3x8xf32, #tpu.memory_space<vmem>>, vector<3x3x8xf32>
    %7 = vector.extract_strided_slice %5 {offsets = [0, 0, 0], sizes = [18, 16, 8], strides = [1, 1, 1]} : vector<18x18x8xf32> to vector<18x16x8xf32>
    %8 = vector.extract_strided_slice %5 {offsets = [0, 1, 0], sizes = [18, 16, 8], strides = [1, 1, 1]} : vector<18x18x8xf32> to vector<18x16x8xf32>
    %9 = vector.extract_strided_slice %5 {offsets = [0, 2, 0], sizes = [18, 16, 8], strides = [1, 1, 1]} : vector<18x18x8xf32> to vector<18x16x8xf32>
    %cst_14 = arith.constant 0.000000e+00 : f32
    %10 = vector.broadcast %cst_14 : f32 to vector<16x16x8xf32>
    %11 = vector.extract_strided_slice %7 {offsets = [0, 0, 0], sizes = [16, 16, 8], strides = [1, 1, 1]} : vector<18x16x8xf32> to vector<16x16x8xf32>
    %12 = vector.extract_strided_slice %6 {offsets = [0, 0, 0], sizes = [1, 1, 8], strides = [1, 1, 1]} : vector<3x3x8xf32> to vector<1x1x8xf32>
    %13 = vector.shape_cast %12 : vector<1x1x8xf32> to vector<8xf32>
    %14 = vector.shape_cast %13 : vector<8xf32> to vector<1x1x8xf32>
    %15 = vector.broadcast %14 : vector<1x1x8xf32> to vector<16x16x8xf32>
    %16 = arith.mulf %11, %15 : vector<16x16x8xf32>
    %17 = arith.addf %10, %16 : vector<16x16x8xf32>
    %18 = vector.extract_strided_slice %7 {offsets = [1, 0, 0], sizes = [16, 16, 8], strides = [1, 1, 1]} : vector<18x16x8xf32> to vector<16x16x8xf32>
    %19 = vector.extract_strided_slice %6 {offsets = [1, 0, 0], sizes = [1, 1, 8], strides = [1, 1, 1]} : vector<3x3x8xf32> to vector<1x1x8xf32>
    %20 = vector.shape_cast %19 : vector<1x1x8xf32> to vector<8xf32>
    %21 = vector.shape_cast %20 : vector<8xf32> to vector<1x1x8xf32>
    %22 = vector.broadcast %21 : vector<1x1x8xf32> to vector<16x16x8xf32>
    %23 = arith.mulf %18, %22 : vector<16x16x8xf32>
    %24 = arith.addf %17, %23 : vector<16x16x8xf32>
    %25 = vector.extract_strided_slice %7 {offsets = [2, 0, 0], sizes = [16, 16, 8], strides = [1, 1, 1]} : vector<18x16x8xf32> to vector<16x16x8xf32>
    %26 = vector.extract_strided_slice %6 {offsets = [2, 0, 0], sizes = [1, 1, 8], strides = [1, 1, 1]} : vector<3x3x8xf32> to vector<1x1x8xf32>
    %27 = vector.shape_cast %26 : vector<1x1x8xf32> to vector<8xf32>
    %28 = vector.shape_cast %27 : vector<8xf32> to vector<1x1x8xf32>
    %29 = vector.broadcast %28 : vector<1x1x8xf32> to vector<16x16x8xf32>
    %30 = arith.mulf %25, %29 : vector<16x16x8xf32>
    %31 = arith.addf %24, %30 : vector<16x16x8xf32>
    %32 = vector.extract_strided_slice %8 {offsets = [0, 0, 0], sizes = [16, 16, 8], strides = [1, 1, 1]} : vector<18x16x8xf32> to vector<16x16x8xf32>
    %33 = vector.extract_strided_slice %6 {offsets = [0, 1, 0], sizes = [1, 1, 8], strides = [1, 1, 1]} : vector<3x3x8xf32> to vector<1x1x8xf32>
    %34 = vector.shape_cast %33 : vector<1x1x8xf32> to vector<8xf32>
    %35 = vector.shape_cast %34 : vector<8xf32> to vector<1x1x8xf32>
    %36 = vector.broadcast %35 : vector<1x1x8xf32> to vector<16x16x8xf32>
    %37 = arith.mulf %32, %36 : vector<16x16x8xf32>
    %38 = arith.addf %31, %37 : vector<16x16x8xf32>
    %39 = vector.extract_strided_slice %8 {offsets = [1, 0, 0], sizes = [16, 16, 8], strides = [1, 1, 1]} : vector<18x16x8xf32> to vector<16x16x8xf32>
    %40 = vector.extract_strided_slice %6 {offsets = [1, 1, 0], sizes = [1, 1, 8], strides = [1, 1, 1]} : vector<3x3x8xf32> to vector<1x1x8xf32>
    %41 = vector.shape_cast %40 : vector<1x1x8xf32> to vector<8xf32>
    %42 = vector.shape_cast %41 : vector<8xf32> to vector<1x1x8xf32>
    %43 = vector.broadcast %42 : vector<1x1x8xf32> to vector<16x16x8xf32>
    %44 = arith.mulf %39, %43 : vector<16x16x8xf32>
    %45 = arith.addf %38, %44 : vector<16x16x8xf32>
    %46 = vector.extract_strided_slice %8 {offsets = [2, 0, 0], sizes = [16, 16, 8], strides = [1, 1, 1]} : vector<18x16x8xf32> to vector<16x16x8xf32>
    %47 = vector.extract_strided_slice %6 {offsets = [2, 1, 0], sizes = [1, 1, 8], strides = [1, 1, 1]} : vector<3x3x8xf32> to vector<1x1x8xf32>
    %48 = vector.shape_cast %47 : vector<1x1x8xf32> to vector<8xf32>
    %49 = vector.shape_cast %48 : vector<8xf32> to vector<1x1x8xf32>
    %50 = vector.broadcast %49 : vector<1x1x8xf32> to vector<16x16x8xf32>
    %51 = arith.mulf %46, %50 : vector<16x16x8xf32>
    %52 = arith.addf %45, %51 : vector<16x16x8xf32>
    %53 = vector.extract_strided_slice %9 {offsets = [0, 0, 0], sizes = [16, 16, 8], strides = [1, 1, 1]} : vector<18x16x8xf32> to vector<16x16x8xf32>
    %54 = vector.extract_strided_slice %6 {offsets = [0, 2, 0], sizes = [1, 1, 8], strides = [1, 1, 1]} : vector<3x3x8xf32> to vector<1x1x8xf32>
    %55 = vector.shape_cast %54 : vector<1x1x8xf32> to vector<8xf32>
    %56 = vector.shape_cast %55 : vector<8xf32> to vector<1x1x8xf32>
    %57 = vector.broadcast %56 : vector<1x1x8xf32> to vector<16x16x8xf32>
    %58 = arith.mulf %53, %57 : vector<16x16x8xf32>
    %59 = arith.addf %52, %58 : vector<16x16x8xf32>
    %60 = vector.extract_strided_slice %9 {offsets = [1, 0, 0], sizes = [16, 16, 8], strides = [1, 1, 1]} : vector<18x16x8xf32> to vector<16x16x8xf32>
    %61 = vector.extract_strided_slice %6 {offsets = [1, 2, 0], sizes = [1, 1, 8], strides = [1, 1, 1]} : vector<3x3x8xf32> to vector<1x1x8xf32>
    %62 = vector.shape_cast %61 : vector<1x1x8xf32> to vector<8xf32>
    %63 = vector.shape_cast %62 : vector<8xf32> to vector<1x1x8xf32>
    %64 = vector.broadcast %63 : vector<1x1x8xf32> to vector<16x16x8xf32>
    %65 = arith.mulf %60, %64 : vector<16x16x8xf32>
    %66 = arith.addf %59, %65 : vector<16x16x8xf32>
    %67 = vector.extract_strided_slice %9 {offsets = [2, 0, 0], sizes = [16, 16, 8], strides = [1, 1, 1]} : vector<18x16x8xf32> to vector<16x16x8xf32>
    %68 = vector.extract_strided_slice %6 {offsets = [2, 2, 0], sizes = [1, 1, 8], strides = [1, 1, 1]} : vector<3x3x8xf32> to vector<1x1x8xf32>
    %69 = vector.shape_cast %68 : vector<1x1x8xf32> to vector<8xf32>
    %70 = vector.shape_cast %69 : vector<8xf32> to vector<1x1x8xf32>
    %71 = vector.broadcast %70 : vector<1x1x8xf32> to vector<16x16x8xf32>
    %72 = arith.mulf %67, %71 : vector<16x16x8xf32>
    %73 = arith.addf %66, %72 : vector<16x16x8xf32>
    %c0_15 = arith.constant 0 : index
    %c0_16 = arith.constant 0 : index
    %c0_17 = arith.constant 0 : index
    %c0_18 = arith.constant 0 : index
    %74 = vector.load %arg3[%c0_15, %c0_16, %c0_17, %c0_18] : memref<1x16x16x8xf32, #tpu.memory_space<vmem>>, vector<1x16x16x8xf32>
    %75 = vector.shape_cast %74 : vector<1x16x16x8xf32> to vector<16x16x8xf32>
    %76 = vector.shape_cast %73 : vector<16x16x8xf32> to vector<1x16x16x8xf32>
    tpu.vector_store %arg3[%c0_15, %c0_16, %c0_17, %c0_18], %76 {strides = array<i32>} : memref<1x16x16x8xf32, #tpu.memory_space<vmem>>, vector<1x16x16x8xf32>,
    %cst_19 = arith.constant dense<0.000000e+00> : vector<8xf32>
    %77 = vector.multi_reduction <add>, %73, %cst_19 [0, 1] : vector<16x16x8xf32> to vector<8xf32>
    %78 = vector.shape_cast %77 : vector<8xf32> to vector<1x1x8xf32>
    %c0_20 = arith.constant 0 : index
    %c0_21 = arith.constant 0 : index
    %c0_22 = arith.constant 0 : index
    %79 = vector.load %arg4[%c0_20, %c0_21, %c0_22] : memref<1x1x8xf32, #tpu.memory_space<vmem>>, vector<1x1x8xf32>
    tpu.vector_store %arg4[%c0_20, %c0_21, %c0_22], %78 {strides = array<i32>} : memref<1x1x8xf32, #tpu.memory_space<vmem>>, vector<1x1x8xf32>,
    %80 = arith.mulf %73, %73 : vector<16x16x8xf32>
    %cst_23 = arith.constant dense<0.000000e+00> : vector<8xf32>
    %81 = vector.multi_reduction <add>, %80, %cst_23 [0, 1] : vector<16x16x8xf32> to vector<8xf32>
    %82 = vector.shape_cast %81 : vector<8xf32> to vector<1x1x8xf32>
    %c0_24 = arith.constant 0 : index
    %c0_25 = arith.constant 0 : index
    %c0_26 = arith.constant 0 : index
    %83 = vector.load %arg5[%c0_24, %c0_25, %c0_26] : memref<1x1x8xf32, #tpu.memory_space<vmem>>, vector<1x1x8xf32>
    tpu.vector_store %arg5[%c0_24, %c0_25, %c0_26], %82 {strides = array<i32>} : memref<1x1x8xf32, #tpu.memory_space<vmem>>, vector<1x1x8xf32>,
    return
  }
  func.func @transform_0(%arg0: i32) -> (i32, i32, i32, i32) {
    %c0_i32 = arith.constant 0 : i32
    %c0_i32_0 = arith.constant 0 : i32
    %c0_i32_1 = arith.constant 0 : i32
    %c0_i32_2 = arith.constant 0 : i32
    return %arg0, %c0_i32, %c0_i32_0, %c0_i32_1 : i32, i32, i32, i32
  }
  func.func @transform_1(%arg0: i32) -> (i32, i32, i32) {
    %c0_i32 = arith.constant 0 : i32
    %c0_i32_0 = arith.constant 0 : i32
    %c0_i32_1 = arith.constant 0 : i32
    %c0_i32_2 = arith.constant 0 : i32
    return %c0_i32, %c0_i32_0, %c0_i32_1 : i32, i32, i32
  }
  func.func @transform_2(%arg0: i32) -> (i32, i32, i32, i32) {
    %c0_i32 = arith.constant 0 : i32
    %c0_i32_0 = arith.constant 0 : i32
    %c0_i32_1 = arith.constant 0 : i32
    %c0_i32_2 = arith.constant 0 : i32
    return %arg0, %c0_i32, %c0_i32_0, %c0_i32_1 : i32, i32, i32, i32
  }
  func.func @transform_3(%arg0: i32) -> (i32, i32, i32) {
    %c0_i32 = arith.constant 0 : i32
    %c0_i32_0 = arith.constant 0 : i32
    %c0_i32_1 = arith.constant 0 : i32
    return %arg0, %c0_i32, %c0_i32_0 : i32, i32, i32
  }
  func.func @transform_4(%arg0: i32) -> (i32, i32, i32) {
    %c0_i32 = arith.constant 0 : i32
    %c0_i32_0 = arith.constant 0 : i32
    %c0_i32_1 = arith.constant 0 : i32
    return %arg0, %c0_i32, %c0_i32_0 : i32, i32, i32
  }
}

</mosaic_0001>

<bundles_post_ra>
// kernel: tpu_custom_call.1
= control target key start
LH: loop header
LB: loop body
LE: loop exit
PB: predicated region body
PF: predicated region fallthrough
CT: control target
= control target key end

     0   :  { %10 = vsyncpa [#allocation4], 0  ;;  %s4241_s0 = inlined_call_operand.vmem [shape: f32[2,16,16,8], index: 0, kind: input, shape index: {}]   ;;  %s4242_s1 = inlined_call_operand.vmem [shape: f32[3,3,8], index: 1, kind: input, shape index: {}]   ;;  %s4243_s2 = inlined_call_operand.vmem [shape: f32[2,16,16,8], index: 2, kind: output, shape index: {0}]   ;;  %s4244_s3 = inlined_call_operand.hbm [shape: f32[2,1,8], index: 3, kind: output, shape index: {1}]   ;;  %s4245_s4 = inlined_call_operand.hbm [shape: f32[2,1,8], index: 4, kind: output, shape index: {2}]  }
   0x1   :  { %12 = vsyncpa [#allocation4 + $0x1], 0 }
   0x2   :  { %13 = vsyncpa [#allocation6], 0 }
   0x3   :  { %15 = vsyncpa [#allocation6 + $0x1], 0  ;;  %s2568_s15 = smov 0   ;;  %s2570_s16 = smov 0  }
   0x4   :  { %s2572_s17 = smov 0   ;;  %s2574_s18 = smov 0  }
   0x5 LB: > { %s2589_s19 = sadd.s32 4294967295, %s2540_s18   ;;  %s2389_s20 = sadd.s32 4294967294, %s2540_s18   ;;  %s2540_s18 = sphi %s2574_s18, %s4251_s18   ;;  %s2536_s17 = sphi %s2572_s17, %s4250_s17   ;;  %s2532_s16 = sphi %s2570_s16, %s4249_s16   ;;  %s2528_s15 = sphi %s2568_s15, %s4248_s15  }
   0x6   : > { %s2593_s21 = sadd.s32 1, %s2540_s18   ;;  %s101_s22 = sadd.s32 1, %s2536_s17 }
   0x7   : > { %s98_s23 = ssub.s32 %s2540_s18, %s2593_s21  ;;  %p111_p0 = scmp.ne.s32.totalorder %s2536_s17, %s2532_s16 }
   0x8   : > { %p99_p1 = scmp.eq.s32.totalorder %s98_s23, 0  ;;  %p112_p2 = scmp.eq.s32.totalorder %s2589_s19, 1 }
   0x9   : > { %p117_p3 = scmp.ne.s32.totalorder %s2532_s16, %s2528_s15  ;;  %p118_p4 = scmp.eq.s32.totalorder %s2389_s20, 1 }
   0xa   : > { %s2604_s24 = scalar_select %p99_p1, %s2536_s17, %s101_s22  }
   0xb   : > { %p2606_p5 = por %p112_p2, %p111_p0  ;;  %p2610_p6 = por %p118_p4, %p117_p3 }
   0xc   : > { %p2392_p7 = scmp.ge.s32.totalorder %s2540_s18, 1  ;;  %p173_p8 = scmp.lt.s32.totalorder %s2540_s18, 3 }
   0xe   : > { %p174_p9 = pnand %p2392_p7, %p173_p8 }
   0xf   : > { %p207_p10 = scmp.lt.s32.totalorder (!%p174_p9), %s2589_s19, 1  ;;  %s4170_s20 = sand.u32 (!%p174_p9), 1, %s2532_s16  }
  0x10   : > { %177 = sbr.rel (%p174_p9) target bundleno = 433 (0x1b1), region = 28  ;;  %s2277_s6 = scalar_lea.hbm (!%p174_p9), %s4245_s4, %s2589_s19 }
  0x11   : > { %s206_s8 = scalar_lea.vmem (!%p174_p9), [#allocation5], %s4170_s20  ;;  %s4189_s10 = sshll.u32 (!%p174_p9), %s2277_s6, 4  ;;  %s2282_s10 = int_to_ptr.hbm [resolvable:$true] %s4189_s10 }
  0x12   : > { %s4186_s9 = sshll.u32 (!%p174_p9), %s206_s8, 4  ;;  %s2466_s22 = scalar_lea.hbm (!%p174_p9), %s4244_s3, 2  ;;  %s2280_s9 = int_to_ptr.vmem [resolvable:$true] %s4186_s9 }
  0x15   : > { %vm217_vm0 = vcmask 64512   ;;  %v2542_v0 = vmov 0.0   ;;  %vm220_vm1 = vcmask 58368   ;;  %s2702_s27 = scalar_select %p207_p10, %s2589_s19, 1  ;;  %v392_v1 = vld [vmem:[%s4242_s1] sm:$0x7] }
  0x16   : > { %222 = vst.msk [vmem:[#allocation2 + $0x18] sm:$0xff] %vm217_vm0, %v2542_v0  ;;  %v2729_v2 = vperm.slane %v392_v1, 1  ;;  %v2733_v5 = vperm.slane %v392_v1, 2  ;;  %v393_v12 = vld [vmem:[%s4242_s1 + $0x4] sm:$0x7]  ;;  %v2760_v20 = vperm.slane %v392_v1, 0 }
  0x17   : > { %218 = vst.msk [vmem:[#allocation2] sm:$0xff] %vm217_vm0, %v2542_v0  ;;  %s2399_s28 = sshll.u32 %s2702_s27, 8  ;;  %v394_v21 = vld [vmem:[%s4242_s1 + $0x8] sm:$0x7]  ;;  %v2766_v22 = vperm.slane %v393_v12, 0  ;;  %vm687_vm2 = vcmask 1046528   ;;  %s2264_s27 = scalar_lea.hbm %s4244_s3, %s2589_s19 }
  0x18   : > { %219 = vst.msk [vmem:[#allocation2 + $0x8] sm:$0xff] %vm217_vm0, %v2542_v0  ;;  %s2727_s7 = scalar_lea.vmem %s4241_s0, %s2399_s28  ;;  %v2772_v31 = vperm.slane %v393_v12, 1  ;;  %vm1411_vm3 = vcmask 1045504   ;;  %v2774_v32 = vperm.slane %v393_v12, 2  ;;  %v2782_v37 = vperm.slane %v394_v21, 0  ;;  %s2917_s14 = scalar_lea.vmem %s4243_s2, %s2399_s28 }
  0x19   : > { %223 = vst.msk [vmem:[#allocation2 + $0x20] sm:$0xff] %vm217_vm0, %v2542_v0  ;;  %v273_v7 = vld [vmem:[%s2727_s7] sm:$0xff]  ;;  %v274_v8 = vld [vmem:[%s2727_s7 + $0x8] sm:$0xff]  ;;  %v275_v11 = vld [vmem:[%s2727_s7 + $0x10] sm:$0xff]  ;;  %v2784_v38 = vperm.slane %v394_v21, 1  ;;  %v2786_v39 = vperm.slane %v394_v21, 2 }
  0x1a   : > { %225 = vst.msk [vmem:[#allocation2 + $0x30] sm:$0xff] %vm217_vm0, %v2542_v0  ;;  %v276_v17 = vld [vmem:[%s2727_s7 + $0x18] sm:$0xff]  ;;  %v277_v18 = vld [vmem:[%s2727_s7 + $0x20] sm:$0xff]  ;;  %v278_v19 = vld [vmem:[%s2727_s7 + $0x28] sm:$0xff]  ;;  %s200_s28 = scalar_lea.vmem [#allocation3], %s4170_s20  ;;  %vm2139_vm4 = vcmask 57344  }
  0x1b   : > { %226 = vst.msk [vmem:[#allocation2 + $0x38] sm:$0xff] %vm217_vm0, %v2542_v0  ;;  %v279_v25 = vld [vmem:[%s2727_s7 + $0x30] sm:$0xff]  ;;  %v280_v30 = vld [vmem:[%s2727_s7 + $0x38] sm:$0xff]  ;;  %v281_v33 = vld [vmem:[%s2727_s7 + $0x40] sm:$0xff]  ;;  %s4177_s29 = sshll.u32 %s200_s28, 4  ;;  %s2249_s19 = scalar_lea.sflag [#allocation4], %s4170_s20  ;;  %s2267_s29 = int_to_ptr.vmem [resolvable:$true] %s4177_s29 }
  0x1c   : > { %228 = vst.msk [vmem:[#allocation2 + $0x48] sm:$0xff] %vm217_vm0, %v2542_v0  ;;  %v282_v35 = vld [vmem:[%s2727_s7 + $0x48] sm:$0xff]  ;;  %v283_v40 = vld [vmem:[%s2727_s7 + $0x50] sm:$0xff]  ;;  %v284_v46 = vld [vmem:[%s2727_s7 + $0x58] sm:$0xff] }
  0x1d   : > { %229 = vst.msk [vmem:[#allocation2 + $0x50] sm:$0xff] %vm217_vm0, %v2542_v0  ;;  %v285_v53 = vld [vmem:[%s2727_s7 + $0x60] sm:$0xff]  ;;  %v286_v59 = vld [vmem:[%s2727_s7 + $0x68] sm:$0xff]  ;;  %v287_v1 = vld [vmem:[%s2727_s7 + $0x70] sm:$0xff] }
  0x1e   : > { %231 = vst.msk [vmem:[#allocation2 + $0x60] sm:$0xff] %vm217_vm0, %v2542_v0  ;;  %v338_v3 = vld [vmem:[#allocation2] sm:$0xff] }
  0x1f   : > { %232 = vst.msk [vmem:[#allocation2 + $0x68] sm:$0xff] %vm217_vm0, %v2542_v0  ;;  %v339_v4 = vld [vmem:[#allocation2 + $0x8] sm:$0xff]  ;;  %v591_v9 = vmul.f32 %v2729_v2, %v338_v3  ;;  %v1315_v13 = vmul.f32 %v2733_v5, %v338_v3  ;;  %v396_v34 = vmul.f32 %v2760_v20, %v338_v3 }
  0x20   : > { %234 = vst.msk [vmem:[#allocation2 + $0x78] sm:$0xff] %vm217_vm0, %v2542_v0  ;;  %v592_v10 = vmul.f32 %v2729_v2, %v339_v4  ;;  %v1316_v14 = vmul.f32 %v2733_v5, %v339_v4  ;;  %v397_v36 = vmul.f32 %v2760_v20, %v339_v4 }
  0x21   : > { %235 = vst.msk [vmem:[#allocation2 + $0x80] sm:$0xff] %vm217_vm0, %v2542_v0  ;;  %v688_v23 = vrot.slane %v591_v9, 1  ;;  %v1412_v26 = vrot.slane %v1315_v13, 2 }
  0x22   : > { %237 = vst.msk [vmem:[#allocation2 + $0x90] sm:$0xff] %vm217_vm0, %v2542_v0  ;;  %v689_v24 = vrot.slane %v592_v10, 1  ;;  %v1413_v27 = vrot.slane %v1316_v14, 2  ;;  %v289_v14 = vld [vmem:[%s2727_s7 + $0x80] sm:$0xff] }
  0x23   : > { %238 = vst.msk [vmem:[#allocation2 + $0x98] sm:$0xff] %vm217_vm0, %v2542_v0 }
  0x24   : > { %240 = vst.msk [vmem:[#allocation2 + $0xa8] sm:$0xff] %vm217_vm0, %v2542_v0  ;;  %v690_v42 = vsel %vm687_vm2, %v688_v23, %v689_v24  ;;  %v2794_v43 = vsel %vm1411_vm3, %v1412_v26, %v1413_v27  ;;  %v291_v26 = vld [vmem:[%s2727_s7 + $0x90] sm:$0xff] }
  0x25   : > { %241 = vst.msk [vmem:[#allocation2 + $0xb0] sm:$0xff] %vm217_vm0, %v2542_v0 }
  0x26   : > { %243 = vst.msk [vmem:[#allocation2 + $0xc0] sm:$0xff] %vm217_vm0, %v2542_v0 }
  0x27   : > { %244 = vst.msk [vmem:[#allocation2 + $0xc8] sm:$0xff] %vm217_vm0, %v2542_v0 }
  0x28   : > { %246 = vst.msk [vmem:[#allocation2 + $0xd8] sm:$0xff] %vm217_vm0, %v2542_v0 }
  0x29   : > { %247 = vst.msk [vmem:[#allocation2 + $0xe0] sm:$0xff] %vm217_vm0, %v2542_v0 }
  0x2a   : > { %249 = vst.msk [vmem:[#allocation2 + $0xf0] sm:$0xff] %vm217_vm0, %v2542_v0 }
  0x2b   : > { %250 = vst.msk [vmem:[#allocation2 + $0xf8] sm:$0xff] %vm217_vm0, %v2542_v0 }
  0x2c   : > { %252 = vst.msk [vmem:[#allocation2 + $0x108] sm:$0xff] %vm217_vm0, %v2542_v0 }
  0x2d   : > { %253 = vst.msk [vmem:[#allocation2 + $0x110] sm:$0xff] %vm217_vm0, %v2542_v0 }
  0x2e   : > { %255 = vst.msk [vmem:[#allocation2 + $0x120] sm:$0xff] %vm217_vm0, %v2542_v0 }
  0x2f   : > { %256 = vst.msk [vmem:[#allocation2 + $0x128] sm:$0xff] %vm217_vm0, %v2542_v0 }
  0x30   : > { %258 = vst.msk [vmem:[#allocation2 + $0x138] sm:$0xff] %vm217_vm0, %v2542_v0 }
  0x31   : > { %259 = vst.msk [vmem:[#allocation2 + $0x140] sm:$0xff] %vm217_vm0, %v2542_v0 }
  0x32   : > { %261 = vst.msk [vmem:[#allocation2 + $0x150] sm:$0xff] %vm217_vm0, %v2542_v0 }
  0x33   : > { %262 = vst.msk [vmem:[#allocation2 + $0x158] sm:$0xff] %vm217_vm0, %v2542_v0 }
  0x34   : > { %264 = vst.msk [vmem:[#allocation2 + $0x168] sm:$0xff] %vm217_vm0, %v2542_v0 }
  0x35   : > { %265 = vst.msk [vmem:[#allocation2 + $0x170] sm:$0xff] %vm217_vm0, %v2542_v0 }
  0x36   : > { %267 = vst.msk [vmem:[#allocation2 + $0x180] sm:$0xff] %vm217_vm0, %v2542_v0 }
  0x37   : > { %268 = vst.msk [vmem:[#allocation2 + $0x188] sm:$0xff] %vm217_vm0, %v2542_v0 }
  0x38   : > { %270 = vst.msk [vmem:[#allocation2 + $0x198] sm:$0xff] %vm217_vm0, %v2542_v0 }
  0x39   : > { %271 = vst.msk [vmem:[#allocation2 + $0x1a0] sm:$0xff] %vm217_vm0, %v2542_v0 }
  0x3a   : > { %224 = vst.msk [vmem:[#allocation2 + $0x28] sm:$0x3] %vm220_vm1, %v2542_v0 }
  0x3b   : > { %221 = vst.msk [vmem:[#allocation2 + $0x10] sm:$0x3] %vm220_vm1, %v2542_v0 }
  0x3c   : > { %227 = vst.msk [vmem:[#allocation2 + $0x40] sm:$0x3] %vm220_vm1, %v2542_v0 }
  0x3d   : > { %230 = vst.msk [vmem:[#allocation2 + $0x58] sm:$0x3] %vm220_vm1, %v2542_v0 }
  0x3e   : > { %233 = vst.msk [vmem:[#allocation2 + $0x70] sm:$0x3] %vm220_vm1, %v2542_v0 }
  0x3f   : > { %236 = vst.msk [vmem:[#allocation2 + $0x88] sm:$0x3] %vm220_vm1, %v2542_v0 }
  0x40   : > { %239 = vst.msk [vmem:[#allocation2 + $0xa0] sm:$0x3] %vm220_vm1, %v2542_v0 }
  0x41   : > { %242 = vst.msk [vmem:[#allocation2 + $0xb8] sm:$0x3] %vm220_vm1, %v2542_v0 }
  0x42   : > { %245 = vst.msk [vmem:[#allocation2 + $0xd0] sm:$0x3] %vm220_vm1, %v2542_v0  ;;  %v340_v6 = vld [vmem:[#allocation2 + $0x10] sm:$0x3] }
  0x43   : > { %248 = vst.msk [vmem:[#allocation2 + $0xe8] sm:$0x3] %vm220_vm1, %v2542_v0  ;;  %v593_v15 = vmul.f32 %v2729_v2, %v340_v6  ;;  %v1317_v16 = vmul.f32 %v2733_v5, %v340_v6 }
  0x44   : > { %251 = vst.msk [vmem:[#allocation2 + $0x100] sm:$0x3] %vm220_vm1, %v2542_v0 }
  0x45   : > { %254 = vst.msk [vmem:[#allocation2 + $0x118] sm:$0x3] %vm220_vm1, %v2542_v0  ;;  %v691_v28 = vrot.slane %v593_v15, 1  ;;  %v1415_v29 = vrot.slane %v1317_v16, 2 }
  0x46   : > { %257 = vst.msk [vmem:[#allocation2 + $0x130] sm:$0x3] %vm220_vm1, %v2542_v0 }
  0x47   : > { %260 = vst.msk [vmem:[#allocation2 + $0x148] sm:$0x3] %vm220_vm1, %v2542_v0  ;;  %v2797_v44 = vsel %vm687_vm2, %v689_v24, %v691_v28  ;;  %v2800_v45 = vsel %vm1411_vm3, %v1413_v27, %v1415_v29 }
  0x48   : > { %263 = vst.msk [vmem:[#allocation2 + $0x160] sm:$0x3] %vm220_vm1, %v2542_v0 }
  0x49   : > { %266 = vst.msk [vmem:[#allocation2 + $0x178] sm:$0x3] %vm220_vm1, %v2542_v0 }
  0x4a   : > { %269 = vst.msk [vmem:[#allocation2 + $0x190] sm:$0x3] %vm220_vm1, %v2542_v0 }
  0x4b   : > { %272 = vst.msk [vmem:[#allocation2 + $0x1a8] sm:$0x3] %vm220_vm1, %v2542_v0 }
  0x4c   : > { %306 = vst.msk [vmem:[#allocation2 + $0x19] sm:$0xff] %vm217_vm0, %v273_v7 }
  0x4d   : > { %307 = vst.msk [vmem:[#allocation2 + $0x21] sm:$0xff] %vm217_vm0, %v274_v8  ;;  %v288_v8 = vld [vmem:[%s2727_s7 + $0x78] sm:$0xff] }
  0x4e   : > { %308 = vst.msk [vmem:[#allocation2 + $0x31] sm:$0xff] %vm217_vm0, %v275_v11 }
  0x4f   : > { %309 = vst.msk [vmem:[#allocation2 + $0x39] sm:$0xff] %vm217_vm0, %v276_v17 }
  0x50   : > { %310 = vst.msk [vmem:[#allocation2 + $0x49] sm:$0xff] %vm217_vm0, %v277_v18 }
  0x51   : > { %311 = vst.msk [vmem:[#allocation2 + $0x51] sm:$0xff] %vm217_vm0, %v278_v19  ;;  %v290_v19 = vld [vmem:[%s2727_s7 + $0x88] sm:$0xff] }
  0x52   : > { %312 = vst.msk [vmem:[#allocation2 + $0x61] sm:$0xff] %vm217_vm0, %v279_v25 }
  0x53   : > { %313 = vst.msk [vmem:[#allocation2 + $0x69] sm:$0xff] %vm217_vm0, %v280_v30  ;;  %v2790_v41 = vld [vmem:[#allocation2 + $0x18] sm:$0xff] }
  0x54   : > { %314 = vst.msk [vmem:[#allocation2 + $0x79] sm:$0xff] %vm217_vm0, %v281_v33  ;;  %v2804_v47 = vld [vmem:[#allocation2 + $0x20] sm:$0xff]  ;;  %v461_v48 = vmul.f32 %v2766_v22, %v2790_v41  ;;  %v833_v49 = vmul.f32 %v2772_v31, %v2790_v41  ;;  %v1557_v50 = vmul.f32 %v2774_v32, %v2790_v41  ;;  %v2812_v51 = vld [vmem:[#allocation2 + $0x28] sm:$0x3]  ;;  %v2816_v52 = vmul.f32 %v2760_v20, %v2790_v41  ;;  %v292_v33 = vld [vmem:[%s2727_s7 + $0x98] sm:$0xff] }
  0x55   : > { %315 = vst.msk [vmem:[#allocation2 + $0x81] sm:$0xff] %vm217_vm0, %v282_v35  ;;  %v2820_v54 = vld [vmem:[#allocation2 + $0x30] sm:$0xff]  ;;  %v834_v55 = vmul.f32 %v2772_v31, %v2804_v47  ;;  %v2826_v56 = vmul.f32 %v2774_v32, %v2804_v47  ;;  %v462_v57 = vmul.f32 %v2766_v22, %v2804_v47  ;;  %v835_v58 = vmul.f32 %v2772_v31, %v2812_v51 }
  0x56   : > { %316 = vst.msk [vmem:[#allocation2 + $0x91] sm:$0xff] %vm217_vm0, %v283_v40  ;;  %v2834_v60 = vld [vmem:[#allocation2 + $0x38] sm:$0xff]  ;;  %v493_v61 = vadd.f32 %v461_v48, %v396_v34  ;;  %v526_v62 = vmul.f32 %v2782_v37, %v2820_v54  ;;  %v929_v63 = vrot.slane %v833_v49, 1  ;;  %v1074_v0 = vmul.f32 %v2784_v38, %v2820_v54  ;;  %v2851_v13 = vld [vmem:[#allocation2 + $0x40] sm:$0x3] }
  0x57   : > { %317 = vst.msk [vmem:[#allocation2 + $0x99] sm:$0xff] %vm217_vm0, %v284_v46  ;;  %v930_v3 = vrot.slane %v834_v55, 1  ;;  %v1075_v4 = vmul.f32 %v2784_v38, %v2834_v60  ;;  %v1653_v6 = vrot.slane %v1557_v50, 2  ;;  %v1654_v7 = vrot.slane %v2826_v56, 2  ;;  %v2876_v50 = vld [vmem:[#allocation2 + $0x48] sm:$0xff] }
  0x58   : > { %318 = vst.msk [vmem:[#allocation2 + $0xa9] sm:$0xff] %vm217_vm0, %v285_v53  ;;  %v558_v9 = vadd.f32 %v526_v62, %v493_v61  ;;  %v1170_v10 = vrot.slane %v1074_v0, 1  ;;  %v1798_v11 = vmul.f32 %v2786_v39, %v2820_v54  ;;  %v1799_v12 = vmul.f32 %v2786_v39, %v2834_v60  ;;  %v294_v55 = vld [vmem:[%s2727_s7 + $0xa8] sm:$0xff]  ;;  %v295_v61 = vld [vmem:[%s2727_s7 + $0xb0] sm:$0xff] }
  0x59   : > { %319 = vst.msk [vmem:[#allocation2 + $0xb1] sm:$0xff] %vm217_vm0, %v286_v59  ;;  %v931_v15 = vsel %vm687_vm2, %v929_v63, %v930_v3  ;;  %v1171_v16 = vrot.slane %v1075_v4, 1  ;;  %v1655_v17 = vsel %vm1411_vm3, %v1653_v6, %v1654_v7  ;;  %v494_v18 = vadd.f32 %v462_v57, %v397_v36 }
  0x5a   : > { %320 = vst.msk [vmem:[#allocation2 + $0xc1] sm:$0xff] %vm217_vm0, %v287_v1  ;;  %v800_v21 = vadd.f32 %v690_v42, %v558_v9  ;;  %v1894_v23 = vrot.slane %v1798_v11, 2  ;;  %v1895_v24 = vrot.slane %v1799_v12, 2  ;;  %v527_v25 = vmul.f32 %v2782_v37, %v2834_v60  ;;  %v293_v42 = vld [vmem:[%s2727_s7 + $0xa0] sm:$0xff]  ;;  %v2907_v11 = vld [vmem:[#allocation2 + $0x50] sm:$0xff] }
  0x5b   : > { %321 = vst.msk [vmem:[#allocation2 + $0xc9] sm:$0xff] %vm217_vm0, %v288_v8  ;;  %v1172_v27 = vsel %vm687_vm2, %v1170_v10, %v1171_v16  ;;  %v932_v28 = vrot.slane %v835_v58, 1  ;;  %v1076_v29 = vmul.f32 %v2784_v38, %v2851_v13  ;;  %v1559_v30 = vmul.f32 %v2774_v32, %v2812_v51 }
  0x5c   : > { %322 = vst.msk [vmem:[#allocation2 + $0xd9] sm:$0xff] %vm217_vm0, %v289_v14  ;;  %v1041_v34 = vadd.f32 %v931_v15, %v800_v21  ;;  %v1896_v35 = vsel %vm1411_vm3, %v1894_v23, %v1895_v24  ;;  %v559_v36 = vadd.f32 %v527_v25, %v494_v18  ;;  %v1800_v40 = vmul.f32 %v2786_v39, %v2851_v13 }
  0x5d   : > { %323 = vst.msk [vmem:[#allocation2 + $0xe1] sm:$0xff] %vm217_vm0, %v290_v19  ;;  %v933_v46 = vsel %vm687_vm2, %v930_v3, %v932_v28  ;;  %v1173_v48 = vrot.slane %v1076_v29, 1  ;;  %v1656_v49 = vrot.slane %v1559_v30, 2  ;;  %v463_v53 = vmul.f32 %v2766_v22, %v2820_v54 }
  0x5e   : > { %324 = vst.msk [vmem:[#allocation2 + $0xf1] sm:$0xff] %vm217_vm0, %v291_v26  ;;  %v1282_v56 = vadd.f32 %v1172_v27, %v1041_v34  ;;  %v801_v57 = vadd.f32 %v2797_v44, %v559_v36  ;;  %v1897_v58 = vrot.slane %v1800_v40, 2  ;;  %v528_v59 = vmul.f32 %v2782_v37, %v2876_v50 }
  0x5f   : > { %325 = vst.msk [vmem:[#allocation2 + $0xf9] sm:$0xff] %vm217_vm0, %v292_v33  ;;  %v1174_v62 = vsel %vm687_vm2, %v1171_v16, %v1173_v48  ;;  %v1657_v63 = vsel %vm1411_vm3, %v1654_v7, %v1656_v49  ;;  %v495_v0 = vadd.f32 %v463_v53, %v2816_v52  ;;  %v594_v1 = vmul.f32 %v2729_v2, %v2790_v41 }
  0x60   : > { %326 = vst.msk [vmem:[#allocation2 + $0x109] sm:$0xff] %vm217_vm0, %v293_v42  ;;  %v1524_v44 = vadd.f32 %v2794_v43, %v1282_v56  ;;  %v1042_v3 = vadd.f32 %v933_v46, %v801_v57  ;;  %v1898_v4 = vsel %vm1411_vm3, %v1895_v24, %v1897_v58  ;;  %v2897_v6 = vmul.f32 %v2729_v2, %v2804_v47 }
  0x61   : > { %327 = vst.msk [vmem:[#allocation2 + $0x111] sm:$0xff] %vm217_vm0, %v294_v55  ;;  %v560_v7 = vadd.f32 %v528_v59, %v495_v0  ;;  %v693_v8 = vrot.slane %v594_v1, 1  ;;  %v836_v52 = vmul.f32 %v2772_v31, %v2820_v54  ;;  %v2904_v9 = vmul.f32 %v2772_v31, %v2834_v60 }
  0x62   : > { %328 = vst.msk [vmem:[#allocation2 + $0x121] sm:$0xff] %vm217_vm0, %v295_v61  ;;  %v1765_v43 = vadd.f32 %v1655_v17, %v1524_v44  ;;  %v1283_v10 = vadd.f32 %v1174_v62, %v1042_v3  ;;  %v694_v12 = vrot.slane %v2897_v6, 1  ;;  %v1077_v14 = vmul.f32 %v2784_v38, %v2876_v50 }
  0x63   : > { %v934_v15 = vrot.slane %v836_v52, 1  ;;  %v935_v16 = vrot.slane %v2904_v9, 1  ;;  %v2922_v17 = vmul.f32 %v2784_v38, %v2907_v11  ;;  %v1318_v18 = vmul.f32 %v2733_v5, %v2790_v41 }
  0x64   : > { %v2006_v19 = vadd.f32 %v1896_v35, %v1765_v43  ;;  %v1525_v21 = vadd.f32 %v2800_v45, %v1283_v10  ;;  %v695_v23 = vsel %vm687_vm2, %v693_v8, %v694_v12  ;;  %v1175_v24 = vrot.slane %v1077_v14, 1  ;;  %v2962_v10 = vld [vmem:[#allocation2 + $0x58] sm:$0x3] }
  0x65   : > { %v802_v25 = vadd.f32 %v695_v23, %v560_v7  ;;  %v936_v26 = vsel %vm687_vm2, %v934_v15, %v935_v16  ;;  %v1176_v27 = vrot.slane %v2922_v17, 1  ;;  %v1319_v28 = vmul.f32 %v2733_v5, %v2804_v47 }
  0x66   : > { %2038 = vst.msk [vmem:[%s2917_s14] sm:$0xff] %vm217_vm0, %v2006_v19  ;;  %v2070_v41 = vsel %vm217_vm0, %v2006_v19, 0.0  ;;  %v2141_v45 = vmul.f32 %v2006_v19, %v2006_v19  ;;  %v1766_v29 = vadd.f32 %v1657_v63, %v1525_v21  ;;  %v1417_v30 = vrot.slane %v1318_v18, 2 }
  0x67   : > { %v1043_v33 = vadd.f32 %v936_v26, %v802_v25  ;;  %v1177_v34 = vsel %vm687_vm2, %v1175_v24, %v1176_v27  ;;  %v1418_v35 = vrot.slane %v1319_v28, 2  ;;  %v1560_v36 = vmul.f32 %v2774_v32, %v2820_v54 }
  0x68   : > { %v2173_v40 = vsel %vm217_vm0, %v2141_v45, 0.0  ;;  %v2007_v42 = vadd.f32 %v1898_v4, %v1766_v29  ;;  %v1561_v46 = vmul.f32 %v2774_v32, %v2834_v60  ;;  %v1801_v48 = vmul.f32 %v2786_v39, %v2876_v50 }
  0x69   : > { %v1284_v49 = vadd.f32 %v1177_v34, %v1043_v33  ;;  %v1419_v53 = vsel %vm1411_vm3, %v1417_v30, %v1418_v35  ;;  %v1658_v55 = vrot.slane %v1560_v36, 2  ;;  %v1802_v56 = vmul.f32 %v2786_v39, %v2907_v11 }
  0x6a   : > { %2039 = vst.msk [vmem:[%s2917_s14 + $0x8] sm:$0xff] %vm217_vm0, %v2007_v42  ;;  %v2071_v57 = vsel %vm217_vm0, %v2007_v42, 0.0  ;;  %v2142_v58 = vmul.f32 %v2007_v42, %v2007_v42  ;;  %v1659_v59 = vrot.slane %v1561_v46, 2  ;;  %v1899_v61 = vrot.slane %v1801_v48, 2 }
  0x6b   : > { %v2072_v62 = vadd.f32 %v2071_v57, %v2070_v41  ;;  %v1526_v63 = vadd.f32 %v1419_v53, %v1284_v49  ;;  %v1900_v0 = vrot.slane %v1802_v56, 2  ;;  %v399_v1 = vmul.f32 %v2760_v20, %v2804_v47 }
  0x6c   : > { %v2174_v44 = vsel %vm217_vm0, %v2142_v58, 0.0  ;;  %v1660_v3 = vsel %vm1411_vm3, %v1658_v55, %v1659_v59  ;;  %v464_v4 = vmul.f32 %v2766_v22, %v2834_v60  ;;  %v529_v7 = vmul.f32 %v2782_v37, %v2907_v11  ;;  %v2989_v55 = vld [vmem:[#allocation2 + $0x60] sm:$0xff]  ;;  %v3004_v58 = vld [vmem:[#allocation2 + $0x68] sm:$0xff] }
  0x6d   : > { %v2175_v8 = vadd.f32 %v2174_v44, %v2173_v40  ;;  %v1767_v52 = vadd.f32 %v1660_v3, %v1526_v63  ;;  %v1901_v43 = vsel %vm1411_vm3, %v1899_v61, %v1900_v0  ;;  %v596_v47 = vmul.f32 %v2729_v2, %v2812_v51 }
  0x6e   : > { %v496_v14 = vadd.f32 %v464_v4, %v399_v1  ;;  %v838_v15 = vmul.f32 %v2772_v31, %v2851_v13  ;;  %v1079_v17 = vmul.f32 %v2784_v38, %v2962_v10  ;;  %v1320_v18 = vmul.f32 %v2733_v5, %v2812_v51 }
  0x6f   : > { %v2008_v19 = vadd.f32 %v1901_v43, %v1767_v52  ;;  %v696_v21 = vrot.slane %v596_v47, 1  ;;  %v1562_v23 = vmul.f32 %v2774_v32, %v2851_v13  ;;  %v1803_v24 = vmul.f32 %v2786_v39, %v2962_v10 }
  0x70   : > { %v561_v25 = vadd.f32 %v529_v7, %v496_v14  ;;  %v937_v26 = vrot.slane %v838_v15, 1  ;;  %v1178_v28 = vrot.slane %v1079_v17, 1  ;;  %v1420_v41 = vrot.slane %v1320_v18, 2 }
  0x71   : > { %2040 = vst.msk [vmem:[%s2917_s14 + $0x10] sm:$0xff] %vm217_vm0, %v2008_v19  ;;  %v2073_v45 = vsel %vm217_vm0, %v2008_v19, 0.0  ;;  %v2143_v29 = vmul.f32 %v2008_v19, %v2008_v19  ;;  %v697_v51 = vsel %vm687_vm2, %v694_v12, %v696_v21  ;;  %v1661_v30 = vrot.slane %v1562_v23, 2 }
  0x72   : > { %v2074_v33 = vadd.f32 %v2073_v45, %v2072_v62  ;;  %v803_v34 = vadd.f32 %v697_v51, %v561_v25  ;;  %v938_v36 = vsel %vm687_vm2, %v935_v16, %v937_v26  ;;  %v1179_v40 = vsel %vm687_vm2, %v1176_v27, %v1178_v28 }
  0x73   : > { %v2176_v42 = vsel %vm217_vm0, %v2143_v29, 0.0  ;;  %v1421_v46 = vsel %vm1411_vm3, %v1418_v35, %v1420_v41  ;;  %v1662_v48 = vsel %vm1411_vm3, %v1659_v59, %v1661_v30  ;;  %v1902_v49 = vrot.slane %v1803_v24, 2 }
  0x74   : > { %v2177_v53 = vadd.f32 %v2176_v42, %v2175_v8  ;;  %v1044_v6 = vadd.f32 %v938_v36, %v803_v34  ;;  %v400_v12 = vmul.f32 %v2760_v20, %v2820_v54  ;;  %v465_v9 = vmul.f32 %v2766_v22, %v2876_v50 }
  0x75   : > { %v1903_v16 = vsel %vm1411_vm3, %v1900_v0, %v1902_v49  ;;  %v530_v27 = vmul.f32 %v2782_v37, %v2989_v55  ;;  %v597_v35 = vmul.f32 %v2729_v2, %v2820_v54  ;;  %v3002_v56 = vmul.f32 %v2729_v2, %v2834_v60 }
  0x76   : > { %v1285_v57 = vadd.f32 %v1179_v40, %v1044_v6  ;;  %v497_v59 = vadd.f32 %v465_v9, %v400_v12  ;;  %v839_v61 = vmul.f32 %v2772_v31, %v2876_v50  ;;  %v840_v62 = vmul.f32 %v2772_v31, %v2907_v11 }
  0x77   : > { %v698_v63 = vrot.slane %v597_v35, 1  ;;  %v699_v0 = vrot.slane %v3002_v56, 1  ;;  %v1080_v1 = vmul.f32 %v2784_v38, %v2989_v55  ;;  %v3015_v44 = vmul.f32 %v2784_v38, %v3004_v58  ;;  %v3046_v56 = vld [vmem:[#allocation2 + $0x70] sm:$0x3] }
  0x78   : > { %v1527_v3 = vadd.f32 %v1421_v46, %v1285_v57  ;;  %v562_v4 = vadd.f32 %v530_v27, %v497_v59  ;;  %v939_v7 = vrot.slane %v839_v61, 1  ;;  %v940_v8 = vrot.slane %v840_v62, 1 }
  0x79   : > { %v700_v52 = vsel %vm687_vm2, %v698_v63, %v699_v0  ;;  %v1180_v43 = vrot.slane %v1080_v1, 1  ;;  %v1181_v47 = vrot.slane %v3015_v44, 1  ;;  %v1321_v14 = vmul.f32 %v2733_v5, %v2820_v54 }
  0x7a   : > { %v1768_v15 = vadd.f32 %v1662_v48, %v1527_v3  ;;  %v804_v17 = vadd.f32 %v700_v52, %v562_v4  ;;  %v941_v18 = vsel %vm687_vm2, %v939_v7, %v940_v8  ;;  %v1322_v19 = vmul.f32 %v2733_v5, %v2834_v60 }
  0x7b   : > { %v1182_v21 = vsel %vm687_vm2, %v1180_v43, %v1181_v47  ;;  %v1422_v23 = vrot.slane %v1321_v14, 2  ;;  %v1563_v24 = vmul.f32 %v2774_v32, %v2876_v50  ;;  %v1564_v25 = vmul.f32 %v2774_v32, %v2907_v11 }
  0x7c   : > { %v2009_v26 = vadd.f32 %v1903_v16, %v1768_v15  ;;  %v1045_v28 = vadd.f32 %v941_v18, %v804_v17  ;;  %v1423_v54 = vrot.slane %v1322_v19, 2  ;;  %v1804_v41 = vmul.f32 %v2786_v39, %v2989_v55 }
  0x7d   : > { %v1663_v45 = vrot.slane %v1563_v24, 2  ;;  %v1664_v29 = vrot.slane %v1564_v25, 2  ;;  %v1805_v51 = vmul.f32 %v2786_v39, %v3004_v58  ;;  %v401_v30 = vmul.f32 %v2760_v20, %v2834_v60 }
  0x7e   : > { %2041 = vst.msk [vmem:[%s2917_s14 + $0x18] sm:$0xff] %vm217_vm0, %v2009_v26  ;;  %v2075_v34 = vsel %vm217_vm0, %v2009_v26, 0.0  ;;  %v2144_v36 = vmul.f32 %v2009_v26, %v2009_v26  ;;  %v1286_v40 = vadd.f32 %v1182_v21, %v1045_v28  ;;  %v1424_v42 = vsel %vm1411_vm3, %v1422_v23, %v1423_v54 }
  0x7f   : > { %v2076_v46 = vadd.f32 %v2075_v34, %v2074_v33  ;;  %v1665_v48 = vsel %vm1411_vm3, %v1663_v45, %v1664_v29  ;;  %v1904_v49 = vrot.slane %v1804_v41, 2  ;;  %v1905_v6 = vrot.slane %v1805_v51, 2  ;;  %v3070_v41 = vld [vmem:[#allocation2 + $0x78] sm:$0xff] }
  0x80   : > { %v2178_v12 = vsel %vm217_vm0, %v2144_v36, 0.0  ;;  %v1528_v9 = vadd.f32 %v1424_v42, %v1286_v40  ;;  %v466_v16 = vmul.f32 %v2766_v22, %v2907_v11  ;;  %v531_v60 = vmul.f32 %v2782_v37, %v3004_v58  ;;  %v3084_v36 = vld [vmem:[#allocation2 + $0x80] sm:$0xff] }
  0x81   : > { %v2179_v27 = vadd.f32 %v2178_v12, %v2177_v53  ;;  %v1906_v35 = vsel %vm1411_vm3, %v1904_v49, %v1905_v6  ;;  %v599_v33 = vmul.f32 %v2729_v2, %v2851_v13  ;;  %v841_v57 = vmul.f32 %v2772_v31, %v2962_v10 }
  0x82   : > { %v1769_v59 = vadd.f32 %v1665_v48, %v1528_v9  ;;  %v498_v61 = vadd.f32 %v466_v16, %v401_v30  ;;  %v1082_v62 = vmul.f32 %v2784_v38, %v3046_v56  ;;  %v1323_v63 = vmul.f32 %v2733_v5, %v2851_v13 }
  0x83   : > { %v701_v53 = vrot.slane %v599_v33, 1  ;;  %v942_v1 = vrot.slane %v841_v57, 1  ;;  %v1565_v44 = vmul.f32 %v2774_v32, %v2962_v10  ;;  %v1806_v3 = vmul.f32 %v2786_v39, %v3046_v56 }
  0x84   : > { %v2010_v4 = vadd.f32 %v1906_v35, %v1769_v59  ;;  %v563_v7 = vadd.f32 %v531_v60, %v498_v61  ;;  %v1183_v52 = vrot.slane %v1082_v62, 1  ;;  %v1425_v43 = vrot.slane %v1323_v63, 2 }
  0x85   : > { %v702_v14 = vsel %vm687_vm2, %v699_v0, %v701_v53  ;;  %v943_v15 = vsel %vm687_vm2, %v940_v8, %v942_v1  ;;  %v1666_v17 = vrot.slane %v1565_v44, 2  ;;  %v1907_v18 = vrot.slane %v1806_v3, 2  ;;  %v296_v1 = vld [vmem:[%s2727_s7 + $0xb8] sm:$0xff] }
  0x86   : > { %2042 = vst.msk [vmem:[%s2917_s14 + $0x20] sm:$0xff] %vm217_vm0, %v2010_v4  ;;  %v2077_v13 = vsel %vm217_vm0, %v2010_v4, 0.0  ;;  %v2145_v19 = vmul.f32 %v2010_v4, %v2010_v4  ;;  %v805_v21 = vadd.f32 %v702_v14, %v563_v7  ;;  %v1184_v23 = vsel %vm687_vm2, %v1181_v47, %v1183_v52 }
  0x87   : > { %v2078_v24 = vadd.f32 %v2077_v13, %v2076_v46  ;;  %v1426_v25 = vsel %vm1411_vm3, %v1423_v54, %v1425_v43  ;;  %v1667_v26 = vsel %vm1411_vm3, %v1664_v29, %v1666_v17  ;;  %v1908_v28 = vsel %vm1411_vm3, %v1905_v6, %v1907_v18  ;;  %329 = vst.msk [vmem:[#allocation2 + $0x129] sm:$0xff] %vm217_vm0, %v296_v1 }
  0x88   : > { %v2180_v0 = vsel %vm217_vm0, %v2145_v19, 0.0  ;;  %v1046_v8 = vadd.f32 %v943_v15, %v805_v21  ;;  %v402_v45 = vmul.f32 %v2760_v20, %v2876_v50  ;;  %v467_v51 = vmul.f32 %v2766_v22, %v2989_v55 }
  0x89   : > { %v2181_v30 = vadd.f32 %v2180_v0, %v2179_v27  ;;  %v532_v47 = vmul.f32 %v2782_v37, %v3070_v41  ;;  %v600_v54 = vmul.f32 %v2729_v2, %v2876_v50  ;;  %v3082_v29 = vmul.f32 %v2729_v2, %v2907_v11 }
  0x8a   : > { %v1287_v34 = vadd.f32 %v1184_v23, %v1046_v8  ;;  %v499_v40 = vadd.f32 %v467_v51, %v402_v45  ;;  %v842_v42 = vmul.f32 %v2772_v31, %v2989_v55  ;;  %v3090_v46 = vmul.f32 %v2772_v31, %v3004_v58  ;;  %v3125_v45 = vld [vmem:[#allocation2 + $0x88] sm:$0x3] }
  0x8b   : > { %v703_v48 = vrot.slane %v600_v54, 1  ;;  %v704_v49 = vrot.slane %v3082_v29, 1  ;;  %v1083_v6 = vmul.f32 %v2784_v38, %v3070_v41  ;;  %v3097_v12 = vmul.f32 %v2784_v38, %v3084_v36 }
  0x8c   : > { %v1529_v9 = vadd.f32 %v1426_v25, %v1287_v34  ;;  %v564_v16 = vadd.f32 %v532_v47, %v499_v40  ;;  %v944_v60 = vrot.slane %v842_v42, 1  ;;  %v945_v27 = vrot.slane %v3090_v46, 1 }
  0x8d   : > { %v705_v35 = vsel %vm687_vm2, %v703_v48, %v704_v49  ;;  %v1185_v33 = vrot.slane %v1083_v6, 1  ;;  %v1186_v57 = vrot.slane %v3097_v12, 1  ;;  %v1324_v59 = vmul.f32 %v2733_v5, %v2876_v50 }
  0x8e   : > { %v1770_v61 = vadd.f32 %v1667_v26, %v1529_v9  ;;  %v806_v62 = vadd.f32 %v705_v35, %v564_v16  ;;  %v946_v63 = vsel %vm687_vm2, %v944_v60, %v945_v27  ;;  %v1325_v53 = vmul.f32 %v2733_v5, %v2907_v11 }
  0x8f   : > { %v1187_v44 = vsel %vm687_vm2, %v1185_v33, %v1186_v57  ;;  %v1427_v3 = vrot.slane %v1324_v59, 2  ;;  %v1566_v4 = vmul.f32 %v2774_v32, %v2989_v55  ;;  %v1567_v7 = vmul.f32 %v2774_v32, %v3004_v58 }
  0x90   : > { %v2011_v50 = vadd.f32 %v1908_v28, %v1770_v61  ;;  %v1047_v52 = vadd.f32 %v946_v63, %v806_v62  ;;  %v1428_v43 = vrot.slane %v1325_v53, 2  ;;  %v1807_v14 = vmul.f32 %v2786_v39, %v3070_v41 }
  0x91   : > { %v1668_v15 = vrot.slane %v1566_v4, 2  ;;  %v1669_v17 = vrot.slane %v1567_v7, 2  ;;  %v1808_v18 = vmul.f32 %v2786_v39, %v3084_v36  ;;  %v403_v13 = vmul.f32 %v2760_v20, %v2907_v11  ;;  %v3151_v4 = vld [vmem:[#allocation2 + $0x90] sm:$0xff] }
  0x92   : > { %2043 = vst.msk [vmem:[%s2917_s14 + $0x28] sm:$0xff] %vm217_vm0, %v2011_v50  ;;  %v2079_v19 = vsel %vm217_vm0, %v2011_v50, 0.0  ;;  %v2146_v21 = vmul.f32 %v2011_v50, %v2011_v50  ;;  %v1288_v23 = vadd.f32 %v1187_v44, %v1047_v52  ;;  %v1429_v25 = vsel %vm1411_vm3, %v1427_v3, %v1428_v43 }
  0x93   : > { %v2080_v26 = vadd.f32 %v2079_v19, %v2078_v24  ;;  %v1670_v28 = vsel %vm1411_vm3, %v1668_v15, %v1669_v17  ;;  %v1909_v0 = vrot.slane %v1807_v14, 2  ;;  %v1910_v8 = vrot.slane %v1808_v18, 2 }
  0x94   : > { %v2182_v51 = vsel %vm217_vm0, %v2146_v21, 0.0  ;;  %v1530_v47 = vadd.f32 %v1429_v25, %v1288_v23  ;;  %v468_v11 = vmul.f32 %v2766_v22, %v3004_v58  ;;  %v533_v54 = vmul.f32 %v2782_v37, %v3084_v36  ;;  %v3171_v23 = vld [vmem:[#allocation2 + $0x98] sm:$0xff] }
  0x95   : > { %v2183_v29 = vadd.f32 %v2182_v51, %v2181_v30  ;;  %v1911_v34 = vsel %vm1411_vm3, %v1909_v0, %v1910_v8  ;;  %v602_v24 = vmul.f32 %v2729_v2, %v2962_v10  ;;  %v844_v40 = vmul.f32 %v2772_v31, %v3046_v56 }
  0x96   : > { %v1771_v42 = vadd.f32 %v1670_v28, %v1530_v47  ;;  %v500_v46 = vadd.f32 %v468_v11, %v403_v13  ;;  %v1085_v48 = vmul.f32 %v2784_v38, %v3125_v45  ;;  %v1326_v6 = vmul.f32 %v2733_v5, %v2962_v10  ;;  %v297_v13 = vld [vmem:[%s2727_s7 + $0xc0] sm:$0xff] }
  0x97   : > { %v706_v12 = vrot.slane %v602_v24, 1  ;;  %v947_v9 = vrot.slane %v844_v40, 1  ;;  %v1568_v30 = vmul.f32 %v2774_v32, %v3046_v56  ;;  %v1809_v16 = vmul.f32 %v2786_v39, %v3125_v45  ;;  %330 = vst.msk [vmem:[#allocation2 + $0x139] sm:$0xff] %vm217_vm0, %v297_v13 }
  0x98   : > { %v2012_v60 = vadd.f32 %v1911_v34, %v1771_v42  ;;  %v565_v35 = vadd.f32 %v533_v54, %v500_v46  ;;  %v1188_v33 = vrot.slane %v1085_v48, 1  ;;  %v1430_v59 = vrot.slane %v1326_v6, 2 }
  0x99   : > { %v707_v61 = vsel %vm687_vm2, %v704_v49, %v706_v12  ;;  %v948_v62 = vsel %vm687_vm2, %v945_v27, %v947_v9  ;;  %v1671_v63 = vrot.slane %v1568_v30, 2  ;;  %v1912_v53 = vrot.slane %v1809_v16, 2  ;;  %v298_v30 = vld [vmem:[%s2727_s7 + $0xc8] sm:$0xff] }
  0x9a   : > { %2044 = vst.msk [vmem:[%s2917_s14 + $0x30] sm:$0xff] %vm217_vm0, %v2012_v60  ;;  %v2081_v10 = vsel %vm217_vm0, %v2012_v60, 0.0  ;;  %v2147_v1 = vmul.f32 %v2012_v60, %v2012_v60  ;;  %v807_v44 = vadd.f32 %v707_v61, %v565_v35  ;;  %v1189_v3 = vsel %vm687_vm2, %v1186_v57, %v1188_v33 }
  0x9b   : > { %v2082_v7 = vadd.f32 %v2081_v10, %v2080_v26  ;;  %v1431_v50 = vsel %vm1411_vm3, %v1428_v43, %v1430_v59  ;;  %v1672_v49 = vsel %vm1411_vm3, %v1669_v17, %v1671_v63  ;;  %v1913_v27 = vsel %vm1411_vm3, %v1910_v8, %v1912_v53  ;;  %331 = vst.msk [vmem:[#allocation2 + $0x141] sm:$0xff] %vm217_vm0, %v298_v30 }
  0x9c   : > { %v2184_v52 = vsel %vm217_vm0, %v2147_v1, 0.0  ;;  %v1048_v14 = vadd.f32 %v948_v62, %v807_v44  ;;  %v404_v15 = vmul.f32 %v2760_v20, %v2989_v55  ;;  %v469_v18 = vmul.f32 %v2766_v22, %v3070_v41 }
  0x9d   : > { %v2185_v57 = vadd.f32 %v2184_v52, %v2183_v29  ;;  %v534_v19 = vmul.f32 %v2782_v37, %v3151_v4  ;;  %v603_v43 = vmul.f32 %v2729_v2, %v2989_v55  ;;  %v3168_v17 = vmul.f32 %v2729_v2, %v3004_v58 }
  0x9e   : > { %v1289_v21 = vadd.f32 %v1189_v3, %v1048_v14  ;;  %v501_v25 = vadd.f32 %v469_v18, %v404_v15  ;;  %v845_v26 = vmul.f32 %v2772_v31, %v3070_v41  ;;  %v3177_v28 = vmul.f32 %v2772_v31, %v3084_v36  ;;  %v3212_v18 = vld [vmem:[#allocation2 + $0xa0] sm:$0x3] }
  0x9f   : > { %v708_v0 = vrot.slane %v603_v43, 1  ;;  %v709_v8 = vrot.slane %v3168_v17, 1  ;;  %v1086_v51 = vmul.f32 %v2784_v38, %v3151_v4  ;;  %v3184_v47 = vmul.f32 %v2784_v38, %v3171_v23 }
  0xa0   : > { %v1531_v11 = vadd.f32 %v1431_v50, %v1289_v21  ;;  %v566_v54 = vadd.f32 %v534_v19, %v501_v25  ;;  %v949_v29 = vrot.slane %v845_v26, 1  ;;  %v950_v34 = vrot.slane %v3177_v28, 1 }
  0xa1   : > { %v710_v24 = vsel %vm687_vm2, %v708_v0, %v709_v8  ;;  %v1190_v40 = vrot.slane %v1086_v51, 1  ;;  %v1191_v42 = vrot.slane %v3184_v47, 1  ;;  %v1327_v46 = vmul.f32 %v2733_v5, %v2989_v55 }
  0xa2   : > { %v1772_v48 = vadd.f32 %v1672_v49, %v1531_v11  ;;  %v808_v6 = vadd.f32 %v710_v24, %v566_v54  ;;  %v951_v12 = vsel %vm687_vm2, %v949_v29, %v950_v34  ;;  %v1328_v9 = vmul.f32 %v2733_v5, %v3004_v58 }
  0xa3   : > { %v1192_v16 = vsel %vm687_vm2, %v1190_v40, %v1191_v42  ;;  %v1432_v60 = vrot.slane %v1327_v46, 2  ;;  %v1569_v35 = vmul.f32 %v2774_v32, %v3070_v41  ;;  %v1570_v33 = vmul.f32 %v2774_v32, %v3084_v36 }
  0xa4   : > { %v2013_v55 = vadd.f32 %v1913_v27, %v1772_v48  ;;  %v1049_v59 = vadd.f32 %v951_v12, %v808_v6  ;;  %v1433_v61 = vrot.slane %v1328_v9, 2  ;;  %v1810_v62 = vmul.f32 %v2786_v39, %v3151_v4 }
  0xa5   : > { %v1673_v63 = vrot.slane %v1569_v35, 2  ;;  %v1674_v53 = vrot.slane %v1570_v33, 2  ;;  %v1811_v10 = vmul.f32 %v2786_v39, %v3171_v23  ;;  %v405_v1 = vmul.f32 %v2760_v20, %v3004_v58  ;;  %v3238_v35 = vld [vmem:[#allocation2 + $0xa8] sm:$0xff] }
  0xa6   : > { %2045 = vst.msk [vmem:[%s2917_s14 + $0x38] sm:$0xff] %vm217_vm0, %v2013_v55  ;;  %v2083_v44 = vsel %vm217_vm0, %v2013_v55, 0.0  ;;  %v2148_v3 = vmul.f32 %v2013_v55, %v2013_v55  ;;  %v1290_v50 = vadd.f32 %v1192_v16, %v1049_v59  ;;  %v1434_v49 = vsel %vm1411_vm3, %v1432_v60, %v1433_v61 }
  0xa7   : > { %v2084_v27 = vadd.f32 %v2083_v44, %v2082_v7  ;;  %v1675_v52 = vsel %vm1411_vm3, %v1673_v63, %v1674_v53  ;;  %v1914_v14 = vrot.slane %v1810_v62, 2  ;;  %v1915_v15 = vrot.slane %v1811_v10, 2 }
  0xa8   : > { %v2186_v13 = vsel %vm217_vm0, %v2148_v3, 0.0  ;;  %v1532_v19 = vadd.f32 %v1434_v49, %v1290_v50  ;;  %v470_v58 = vmul.f32 %v2766_v22, %v3084_v36  ;;  %v535_v43 = vmul.f32 %v2782_v37, %v3171_v23  ;;  %v3258_v50 = vld [vmem:[#allocation2 + $0xb0] sm:$0xff] }
  0xa9   : > { %v2187_v17 = vadd.f32 %v2186_v13, %v2185_v57  ;;  %v1916_v21 = vsel %vm1411_vm3, %v1914_v14, %v1915_v15  ;;  %v605_v7 = vmul.f32 %v2729_v2, %v3046_v56  ;;  %v847_v25 = vmul.f32 %v2772_v31, %v3125_v45 }
  0xaa   : > { %v1773_v26 = vadd.f32 %v1675_v52, %v1532_v19  ;;  %v502_v28 = vadd.f32 %v470_v58, %v405_v1  ;;  %v1088_v0 = vmul.f32 %v2784_v38, %v3212_v18  ;;  %v1329_v51 = vmul.f32 %v2733_v5, %v3046_v56  ;;  %v299_v1 = vld [vmem:[%s2727_s7 + $0xd0] sm:$0xff] }
  0xab   : > { %v711_v47 = vrot.slane %v605_v7, 1  ;;  %v952_v11 = vrot.slane %v847_v25, 1  ;;  %v1571_v57 = vmul.f32 %v2774_v32, %v3125_v45  ;;  %v1812_v54 = vmul.f32 %v2786_v39, %v3212_v18  ;;  %332 = vst.msk [vmem:[#allocation2 + $0x151] sm:$0xff] %vm217_vm0, %v299_v1 }
  0xac   : > { %v2014_v29 = vadd.f32 %v1916_v21, %v1773_v26  ;;  %v567_v24 = vadd.f32 %v535_v43, %v502_v28  ;;  %v1193_v40 = vrot.slane %v1088_v0, 1  ;;  %v1435_v46 = vrot.slane %v1329_v51, 2 }
  0xad   : > { %v712_v48 = vsel %vm687_vm2, %v709_v8, %v711_v47  ;;  %v953_v6 = vsel %vm687_vm2, %v950_v34, %v952_v11  ;;  %v1676_v12 = vrot.slane %v1571_v57, 2  ;;  %v1917_v9 = vrot.slane %v1812_v54, 2  ;;  %v300_v57 = vld [vmem:[%s2727_s7 + $0xd8] sm:$0xff] }
  0xae   : > { %2046 = vst.msk [vmem:[%s2917_s14 + $0x40] sm:$0xff] %vm217_vm0, %v2014_v29  ;;  %v2085_v56 = vsel %vm217_vm0, %v2014_v29, 0.0  ;;  %v2149_v30 = vmul.f32 %v2014_v29, %v2014_v29  ;;  %v809_v16 = vadd.f32 %v712_v48, %v567_v24  ;;  %v1194_v60 = vsel %vm687_vm2, %v1191_v42, %v1193_v40 }
  0xaf   : > { %v2086_v33 = vadd.f32 %v2085_v56, %v2084_v27  ;;  %v1436_v55 = vsel %vm1411_vm3, %v1433_v61, %v1435_v46  ;;  %v1677_v8 = vsel %vm1411_vm3, %v1674_v53, %v1676_v12  ;;  %v1918_v34 = vsel %vm1411_vm3, %v1915_v15, %v1917_v9  ;;  %333 = vst.msk [vmem:[#allocation2 + $0x159] sm:$0xff] %vm217_vm0, %v300_v57 }
  0xb0   : > { %v2188_v59 = vsel %vm217_vm0, %v2149_v30, 0.0  ;;  %v1050_v62 = vadd.f32 %v953_v6, %v809_v16  ;;  %v406_v63 = vmul.f32 %v2760_v20, %v3070_v41  ;;  %v471_v10 = vmul.f32 %v2766_v22, %v3151_v4 }
  0xb1   : > { %v2189_v42 = vadd.f32 %v2188_v59, %v2187_v17  ;;  %v536_v44 = vmul.f32 %v2782_v37, %v3238_v35  ;;  %v606_v61 = vmul.f32 %v2729_v2, %v3070_v41  ;;  %v3255_v53 = vmul.f32 %v2729_v2, %v3084_v36 }
  0xb2   : > { %v1291_v3 = vadd.f32 %v1194_v60, %v1050_v62  ;;  %v503_v49 = vadd.f32 %v471_v10, %v406_v63  ;;  %v848_v27 = vmul.f32 %v2772_v31, %v3151_v4  ;;  %v3264_v52 = vmul.f32 %v2772_v31, %v3171_v23  ;;  %v3299_v10 = vld [vmem:[#allocation2 + $0xb8] sm:$0x3] }
  0xb3   : > { %v713_v14 = vrot.slane %v606_v61, 1  ;;  %v714_v15 = vrot.slane %v3255_v53, 1  ;;  %v1089_v13 = vmul.f32 %v2784_v38, %v3238_v35  ;;  %v3271_v19 = vmul.f32 %v2784_v38, %v3258_v50 }
  0xb4   : > { %v1533_v58 = vadd.f32 %v1436_v55, %v1291_v3  ;;  %v568_v43 = vadd.f32 %v536_v44, %v503_v49  ;;  %v954_v17 = vrot.slane %v848_v27, 1  ;;  %v955_v21 = vrot.slane %v3264_v52, 1 }
  0xb5   : > { %v715_v7 = vsel %vm687_vm2, %v713_v14, %v714_v15  ;;  %v1195_v25 = vrot.slane %v1089_v13, 1  ;;  %v1196_v26 = vrot.slane %v3271_v19, 1  ;;  %v1330_v28 = vmul.f32 %v2733_v5, %v3070_v41 }
  0xb6   : > { %v1774_v0 = vadd.f32 %v1677_v8, %v1533_v58  ;;  %v810_v51 = vadd.f32 %v715_v7, %v568_v43  ;;  %v956_v47 = vsel %vm687_vm2, %v954_v17, %v955_v21  ;;  %v1331_v11 = vmul.f32 %v2733_v5, %v3084_v36 }
  0xb7   : > { %v1197_v54 = vsel %vm687_vm2, %v1195_v25, %v1196_v26  ;;  %v1437_v29 = vrot.slane %v1330_v28, 2  ;;  %v1572_v24 = vmul.f32 %v2774_v32, %v3151_v4  ;;  %v1573_v40 = vmul.f32 %v2774_v32, %v3171_v23 }
  0xb8   : > { %v2015_v41 = vadd.f32 %v1918_v34, %v1774_v0  ;;  %v1051_v46 = vadd.f32 %v956_v47, %v810_v51  ;;  %v1438_v48 = vrot.slane %v1331_v11, 2  ;;  %v1813_v6 = vmul.f32 %v2786_v39, %v3238_v35 }
  0xb9   : > { %v1678_v12 = vrot.slane %v1572_v24, 2  ;;  %v1679_v9 = vrot.slane %v1573_v40, 2  ;;  %v1814_v56 = vmul.f32 %v2786_v39, %v3258_v50  ;;  %v407_v30 = vmul.f32 %v2760_v20, %v3084_v36  ;;  %v3325_v24 = vld [vmem:[#allocation2 + $0xc0] sm:$0xff] }
  0xba   : > { %2047 = vst.msk [vmem:[%s2917_s14 + $0x48] sm:$0xff] %vm217_vm0, %v2015_v41  ;;  %v2087_v16 = vsel %vm217_vm0, %v2015_v41, 0.0  ;;  %v2150_v60 = vmul.f32 %v2015_v41, %v2015_v41  ;;  %v1292_v55 = vadd.f32 %v1197_v54, %v1051_v46  ;;  %v1439_v8 = vsel %vm1411_vm3, %v1437_v29, %v1438_v48 }
  0xbb   : > { %v2088_v34 = vadd.f32 %v2087_v16, %v2086_v33  ;;  %v1680_v59 = vsel %vm1411_vm3, %v1678_v12, %v1679_v9  ;;  %v1919_v62 = vrot.slane %v1813_v6, 2  ;;  %v1920_v63 = vrot.slane %v1814_v56, 2 }
  0xbc   : > { %v2190_v1 = vsel %vm217_vm0, %v2150_v60, 0.0  ;;  %v1534_v44 = vadd.f32 %v1439_v8, %v1292_v55  ;;  %v472_v36 = vmul.f32 %v2766_v22, %v3171_v23  ;;  %v537_v61 = vmul.f32 %v2782_v37, %v3258_v50  ;;  %v3345_v55 = vld [vmem:[#allocation2 + $0xc8] sm:$0xff] }
  0xbd   : > { %v2191_v53 = vadd.f32 %v2190_v1, %v2189_v42  ;;  %v1921_v3 = vsel %vm1411_vm3, %v1919_v62, %v1920_v63  ;;  %v608_v33 = vmul.f32 %v2729_v2, %v3125_v45  ;;  %v850_v49 = vmul.f32 %v2772_v31, %v3212_v18 }
  0xbe   : > { %v1775_v27 = vadd.f32 %v1680_v59, %v1534_v44  ;;  %v504_v52 = vadd.f32 %v472_v36, %v407_v30  ;;  %v1091_v14 = vmul.f32 %v2784_v38, %v3299_v10  ;;  %v1332_v13 = vmul.f32 %v2733_v5, %v3125_v45  ;;  %v301_v30 = vld [vmem:[%s2727_s7 + $0xe0] sm:$0xff] }
  0xbf   : > { %v716_v19 = vrot.slane %v608_v33, 1  ;;  %v957_v58 = vrot.slane %v850_v49, 1  ;;  %v1574_v42 = vmul.f32 %v2774_v32, %v3212_v18  ;;  %v1815_v43 = vmul.f32 %v2786_v39, %v3299_v10  ;;  %334 = vst.msk [vmem:[#allocation2 + $0x169] sm:$0xff] %vm217_vm0, %v301_v30 }
  0xc0   : > { %v2016_v17 = vadd.f32 %v1921_v3, %v1775_v27  ;;  %v569_v7 = vadd.f32 %v537_v61, %v504_v52  ;;  %v1198_v25 = vrot.slane %v1091_v14, 1  ;;  %v1440_v28 = vrot.slane %v1332_v13, 2 }
  0xc1   : > { %v717_v0 = vsel %vm687_vm2, %v714_v15, %v716_v19  ;;  %v958_v51 = vsel %vm687_vm2, %v955_v21, %v957_v58  ;;  %v1681_v47 = vrot.slane %v1574_v42, 2  ;;  %v1922_v11 = vrot.slane %v1815_v43, 2  ;;  %v302_v42 = vld [vmem:[%s2727_s7 + $0xe8] sm:$0xff] }
  0xc2   : > { %2048 = vst.msk [vmem:[%s2917_s14 + $0x50] sm:$0xff] %vm217_vm0, %v2016_v17  ;;  %v2089_v45 = vsel %vm217_vm0, %v2016_v17, 0.0  ;;  %v2151_v57 = vmul.f32 %v2016_v17, %v2016_v17  ;;  %v811_v54 = vadd.f32 %v717_v0, %v569_v7  ;;  %v1199_v29 = vsel %vm687_vm2, %v1196_v26, %v1198_v25 }
  0xc3   : > { %v2090_v40 = vadd.f32 %v2089_v45, %v2088_v34  ;;  %v1441_v41 = vsel %vm1411_vm3, %v1438_v48, %v1440_v28  ;;  %v1682_v15 = vsel %vm1411_vm3, %v1679_v9, %v1681_v47  ;;  %v1923_v21 = vsel %vm1411_vm3, %v1920_v63, %v1922_v11  ;;  %335 = vst.msk [vmem:[#allocation2 + $0x171] sm:$0xff] %vm217_vm0, %v302_v42 }
  0xc4   : > { %v2192_v46 = vsel %vm217_vm0, %v2151_v57, 0.0  ;;  %v1052_v6 = vadd.f32 %v958_v51, %v811_v54  ;;  %v408_v12 = vmul.f32 %v2760_v20, %v3151_v4  ;;  %v473_v56 = vmul.f32 %v2766_v22, %v3238_v35 }
  0xc5   : > { %v2193_v26 = vadd.f32 %v2192_v46, %v2191_v53  ;;  %v538_v16 = vmul.f32 %v2782_v37, %v3325_v24  ;;  %v609_v48 = vmul.f32 %v2729_v2, %v3151_v4  ;;  %v3342_v9 = vmul.f32 %v2729_v2, %v3171_v23 }
  0xc6   : > { %v1293_v60 = vadd.f32 %v1199_v29, %v1052_v6  ;;  %v505_v8 = vadd.f32 %v473_v56, %v408_v12  ;;  %v851_v34 = vmul.f32 %v2772_v31, %v3238_v35  ;;  %v3351_v59 = vmul.f32 %v2772_v31, %v3258_v50  ;;  %v3386_v56 = vld [vmem:[#allocation2 + $0xd0] sm:$0x3] }
  0xc7   : > { %v718_v62 = vrot.slane %v609_v48, 1  ;;  %v719_v63 = vrot.slane %v3342_v9, 1  ;;  %v1092_v1 = vmul.f32 %v2784_v38, %v3325_v24  ;;  %v3358_v44 = vmul.f32 %v2784_v38, %v3345_v55 }
  0xc8   : > { %v1535_v36 = vadd.f32 %v1441_v41, %v1293_v60  ;;  %v570_v61 = vadd.f32 %v538_v16, %v505_v8  ;;  %v959_v53 = vrot.slane %v851_v34, 1  ;;  %v960_v3 = vrot.slane %v3351_v59, 1 }
  0xc9   : > { %v720_v33 = vsel %vm687_vm2, %v718_v62, %v719_v63  ;;  %v1200_v49 = vrot.slane %v1092_v1, 1  ;;  %v1201_v27 = vrot.slane %v3358_v44, 1  ;;  %v1333_v52 = vmul.f32 %v2733_v5, %v3151_v4 }
  0xca   : > { %v1776_v14 = vadd.f32 %v1682_v15, %v1535_v36  ;;  %v812_v13 = vadd.f32 %v720_v33, %v570_v61  ;;  %v961_v19 = vsel %vm687_vm2, %v959_v53, %v960_v3  ;;  %v1334_v58 = vmul.f32 %v2733_v5, %v3171_v23 }
  0xcb   : > { %v1202_v43 = vsel %vm687_vm2, %v1200_v49, %v1201_v27  ;;  %v1442_v17 = vrot.slane %v1333_v52, 2  ;;  %v1575_v7 = vmul.f32 %v2774_v32, %v3238_v35  ;;  %v1576_v25 = vmul.f32 %v2774_v32, %v3258_v50 }
  0xcc   : > { %v2017_v4 = vadd.f32 %v1923_v21, %v1776_v14  ;;  %v1053_v28 = vadd.f32 %v961_v19, %v812_v13  ;;  %v1443_v0 = vrot.slane %v1334_v58, 2  ;;  %v1816_v51 = vmul.f32 %v2786_v39, %v3325_v24 }
  0xcd   : > { %v1683_v47 = vrot.slane %v1575_v7, 2  ;;  %v1684_v11 = vrot.slane %v1576_v25, 2  ;;  %v1817_v45 = vmul.f32 %v2786_v39, %v3345_v55  ;;  %v409_v57 = vmul.f32 %v2760_v20, %v3171_v23  ;;  %v3412_v7 = vld [vmem:[#allocation2 + $0xd8] sm:$0xff] }
  0xce   : > { %2049 = vst.msk [vmem:[%s2917_s14 + $0x58] sm:$0xff] %vm217_vm0, %v2017_v4  ;;  %v2091_v54 = vsel %vm217_vm0, %v2017_v4, 0.0  ;;  %v2152_v29 = vmul.f32 %v2017_v4, %v2017_v4  ;;  %v1294_v41 = vadd.f32 %v1202_v43, %v1053_v28  ;;  %v1444_v15 = vsel %vm1411_vm3, %v1442_v17, %v1443_v0 }
  0xcf   : > { %v2092_v21 = vadd.f32 %v2091_v54, %v2090_v40  ;;  %v1685_v46 = vsel %vm1411_vm3, %v1683_v47, %v1684_v11  ;;  %v1924_v6 = vrot.slane %v1816_v51, 2  ;;  %v1925_v12 = vrot.slane %v1817_v45, 2 }
  0xd0   : > { %v2194_v30 = vsel %vm217_vm0, %v2152_v29, 0.0  ;;  %v1536_v16 = vadd.f32 %v1444_v15, %v1294_v41  ;;  %v474_v23 = vmul.f32 %v2766_v22, %v3258_v50  ;;  %v539_v48 = vmul.f32 %v2782_v37, %v3345_v55  ;;  %v3432_v41 = vld [vmem:[#allocation2 + $0xe0] sm:$0xff] }
  0xd1   : > { %v2195_v9 = vadd.f32 %v2194_v30, %v2193_v26  ;;  %v1926_v60 = vsel %vm1411_vm3, %v1924_v6, %v1925_v12  ;;  %v611_v40 = vmul.f32 %v2729_v2, %v3212_v18  ;;  %v853_v8 = vmul.f32 %v2772_v31, %v3299_v10 }
  0xd2   : > { %v1777_v34 = vadd.f32 %v1685_v46, %v1536_v16  ;;  %v506_v59 = vadd.f32 %v474_v23, %v409_v57  ;;  %v1094_v62 = vmul.f32 %v2784_v38, %v3386_v56  ;;  %v1335_v1 = vmul.f32 %v2733_v5, %v3212_v18  ;;  %v303_v57 = vld [vmem:[%s2727_s7 + $0xf0] sm:$0xff] }
  0xd3   : > { %v721_v44 = vrot.slane %v611_v40, 1  ;;  %v962_v36 = vrot.slane %v853_v8, 1  ;;  %v1577_v26 = vmul.f32 %v2774_v32, %v3299_v10  ;;  %v1818_v61 = vmul.f32 %v2786_v39, %v3386_v56  ;;  %336 = vst.msk [vmem:[#allocation2 + $0x181] sm:$0xff] %vm217_vm0, %v303_v57 }
  0xd4   : > { %v2018_v53 = vadd.f32 %v1926_v60, %v1777_v34  ;;  %v571_v33 = vadd.f32 %v539_v48, %v506_v59  ;;  %v1203_v49 = vrot.slane %v1094_v62, 1  ;;  %v1445_v52 = vrot.slane %v1335_v1, 2 }
  0xd5   : > { %v722_v14 = vsel %vm687_vm2, %v719_v63, %v721_v44  ;;  %v963_v13 = vsel %vm687_vm2, %v960_v3, %v962_v36  ;;  %v1686_v19 = vrot.slane %v1577_v26, 2  ;;  %v1927_v58 = vrot.slane %v1818_v61, 2  ;;  %v304_v26 = vld [vmem:[%s2727_s7 + $0xf8] sm:$0xff]  ;;  %s4183_s7 = sshll.u32 %s2264_s27, 4  ;;  %s2269_s7 = int_to_ptr.hbm [resolvable:$true] %s4183_s7 }
  0xd6   : > { %2050 = vst.msk [vmem:[%s2917_s14 + $0x60] sm:$0xff] %vm217_vm0, %v2018_v53  ;;  %v2093_v18 = vsel %vm217_vm0, %v2018_v53, 0.0  ;;  %v2153_v42 = vmul.f32 %v2018_v53, %v2018_v53  ;;  %v813_v43 = vadd.f32 %v722_v14, %v571_v33  ;;  %v1204_v17 = vsel %vm687_vm2, %v1201_v27, %v1203_v49  ;;  %s2460_s11 = sshra.s32 %s2269_s7, 4  ;;  %s2461_s11 = int_to_ptr.hbm [resolvable:$true] %s2460_s11 }
  0xd7   : > { %v2094_v25 = vadd.f32 %v2093_v18, %v2092_v21  ;;  %v1446_v4 = vsel %vm1411_vm3, %v1443_v0, %v1445_v52  ;;  %v1687_v63 = vsel %vm1411_vm3, %v1684_v11, %v1686_v19  ;;  %v1928_v3 = vsel %vm1411_vm3, %v1925_v12, %v1927_v58  ;;  %337 = vst.msk [vmem:[#allocation2 + $0x189] sm:$0xff] %vm217_vm0, %v304_v26  ;;  %s2462_s12 = scalar_lea.hbm %s2461_s11, 1  ;;  %p2467_p0 = scmp.lt.s32.totalorder %s2461_s11, %s4244_s3 }
  0xd8   : > { %v2196_v28 = vsel %vm217_vm0, %v2153_v42, 0.0  ;;  %v1054_v51 = vadd.f32 %v963_v13, %v813_v43  ;;  %v410_v47 = vmul.f32 %v2760_v20, %v3238_v35  ;;  %v475_v45 = vmul.f32 %v2766_v22, %v3325_v24  ;;  %p2463_p11 = scmp.ne.s32.totalorder %s2461_s11, %s2462_s12  ;;  %p2468_p1 = scmp.lt.s32.totalorder %s2466_s22, %s2462_s12 }
  0xd9   : > { %v2197_v27 = vadd.f32 %v2196_v28, %v2195_v9  ;;  %v540_v54 = vmul.f32 %v2782_v37, %v3412_v7  ;;  %v612_v0 = vmul.f32 %v2729_v2, %v3238_v35  ;;  %v3429_v11 = vmul.f32 %v2729_v2, %v3258_v50 }
  0xda   : > { %v1295_v29 = vadd.f32 %v1204_v17, %v1054_v51  ;;  %v507_v15 = vadd.f32 %v475_v45, %v410_v47  ;;  %v854_v21 = vmul.f32 %v2772_v31, %v3325_v24  ;;  %v3438_v46 = vmul.f32 %v2772_v31, %v3345_v55  ;;  %v3473_v45 = vld [vmem:[#allocation2 + $0xe8] sm:$0x3]  ;;  %p2464_p12 = pnand %p2463_p11, %p2606_p5  ;;  %p2469_p2 = por %p2468_p1, %p2467_p0 }
  0xdb   : > { %v723_v6 = vrot.slane %v612_v0, 1  ;;  %v724_v12 = vrot.slane %v3429_v11, 1  ;;  %v1095_v30 = vmul.f32 %v2784_v38, %v3412_v7  ;;  %v3445_v16 = vmul.f32 %v2784_v38, %v3432_v41 }
  0xdc   : > { %v1537_v23 = vadd.f32 %v1446_v4, %v1295_v29  ;;  %v572_v48 = vadd.f32 %v540_v54, %v507_v15  ;;  %v964_v9 = vrot.slane %v854_v21, 1  ;;  %v965_v60 = vrot.slane %v3438_v46, 1  ;;  %p2465_p13 = pneg %p2464_p12 }
  0xdd   : > { %v725_v40 = vsel %vm687_vm2, %v723_v6, %v724_v12  ;;  %v1205_v8 = vrot.slane %v1095_v30, 1  ;;  %v1206_v34 = vrot.slane %v3445_v16, 1  ;;  %v1336_v59 = vmul.f32 %v2733_v5, %v3238_v35 }
  0xde   : > { %v1778_v62 = vadd.f32 %v1687_v63, %v1537_v23  ;;  %v814_v1 = vadd.f32 %v725_v40, %v572_v48  ;;  %v966_v44 = vsel %vm687_vm2, %v964_v9, %v965_v60  ;;  %v1337_v36 = vmul.f32 %v2733_v5, %v3258_v50  ;;  %p2470_p3 = pnand %p2469_p2, %p2465_p13 }
  0xdf   : > { %v1207_v61 = vsel %vm687_vm2, %v1205_v8, %v1206_v34  ;;  %v1447_v53 = vrot.slane %v1336_v59, 2  ;;  %v1578_v33 = vmul.f32 %v2774_v32, %v3325_v24  ;;  %v1579_v49 = vmul.f32 %v2774_v32, %v3345_v55 }
  0xe0   : > { %v2019_v35 = vadd.f32 %v1928_v3, %v1778_v62  ;;  %v1055_v52 = vadd.f32 %v966_v44, %v814_v1  ;;  %v1448_v14 = vrot.slane %v1337_v36, 2  ;;  %v1819_v13 = vmul.f32 %v2786_v39, %v3412_v7 }
  0xe1   : > { %v1688_v19 = vrot.slane %v1578_v33, 2  ;;  %v1689_v58 = vrot.slane %v1579_v49, 2  ;;  %v1820_v18 = vmul.f32 %v2786_v39, %v3432_v41  ;;  %v411_v42 = vmul.f32 %v2760_v20, %v3258_v50  ;;  %v3499_v33 = vld [vmem:[#allocation2 + $0xf0] sm:$0xff] }
  0xe2   : > { %2051 = vst.msk [vmem:[%s2917_s14 + $0x68] sm:$0xff] %vm217_vm0, %v2019_v35  ;;  %v2095_v43 = vsel %vm217_vm0, %v2019_v35, 0.0  ;;  %v2154_v17 = vmul.f32 %v2019_v35, %v2019_v35  ;;  %v1296_v4 = vadd.f32 %v1207_v61, %v1055_v52  ;;  %v1449_v63 = vsel %vm1411_vm3, %v1447_v53, %v1448_v14 }
  0xe3   : > { %v2096_v3 = vadd.f32 %v2095_v43, %v2094_v25  ;;  %v1690_v28 = vsel %vm1411_vm3, %v1688_v19, %v1689_v58  ;;  %v1929_v51 = vrot.slane %v1819_v13, 2  ;;  %v1930_v47 = vrot.slane %v1820_v18, 2 }
  0xe4   : > { %v2198_v57 = vsel %vm217_vm0, %v2154_v17, 0.0  ;;  %v1538_v54 = vadd.f32 %v1449_v63, %v1296_v4  ;;  %v476_v50 = vmul.f32 %v2766_v22, %v3345_v55  ;;  %v541_v0 = vmul.f32 %v2782_v37, %v3432_v41  ;;  %v3517_v17 = vld [vmem:[#allocation2 + $0xf8] sm:$0xff] }
  0xe5   : > { %v2199_v11 = vadd.f32 %v2198_v57, %v2197_v27  ;;  %v1931_v29 = vsel %vm1411_vm3, %v1929_v51, %v1930_v47  ;;  %v614_v25 = vmul.f32 %v2729_v2, %v3299_v10  ;;  %v856_v15 = vmul.f32 %v2772_v31, %v3386_v56 }
  0xe6   : > { %v1779_v21 = vadd.f32 %v1690_v28, %v1538_v54  ;;  %v508_v46 = vadd.f32 %v476_v50, %v411_v42  ;;  %v1097_v6 = vmul.f32 %v2784_v38, %v3473_v45  ;;  %v1338_v30 = vmul.f32 %v2733_v5, %v3299_v10 }
  0xe7   : > { %v726_v16 = vrot.slane %v614_v25, 1  ;;  %v967_v23 = vrot.slane %v856_v15, 1  ;;  %v1580_v27 = vmul.f32 %v2774_v32, %v3386_v56  ;;  %v1821_v48 = vmul.f32 %v2786_v39, %v3473_v45 }
  0xe8   : > { %v2020_v9 = vadd.f32 %v1931_v29, %v1779_v21  ;;  %v573_v40 = vadd.f32 %v541_v0, %v508_v46  ;;  %v1208_v8 = vrot.slane %v1097_v6, 1  ;;  %v1450_v59 = vrot.slane %v1338_v30, 2 }
  0xe9   : > { %v727_v62 = vsel %vm687_vm2, %v724_v12, %v726_v16  ;;  %v968_v1 = vsel %vm687_vm2, %v965_v60, %v967_v23  ;;  %v1691_v44 = vrot.slane %v1580_v27, 2  ;;  %v1932_v36 = vrot.slane %v1821_v48, 2 }
  0xea   : > { %2052 = vst.msk [vmem:[%s2917_s14 + $0x70] sm:$0xff] %vm217_vm0, %v2020_v9  ;;  %v2097_v10 = vsel %vm217_vm0, %v2020_v9, 0.0  ;;  %v2155_v26 = vmul.f32 %v2020_v9, %v2020_v9  ;;  %v815_v61 = vadd.f32 %v727_v62, %v573_v40  ;;  %v1209_v53 = vsel %vm687_vm2, %v1206_v34, %v1208_v8 }
  0xeb   : > { %v2098_v49 = vadd.f32 %v2097_v10, %v2096_v3  ;;  %v1451_v35 = vsel %vm1411_vm3, %v1448_v14, %v1450_v59  ;;  %v1692_v52 = vsel %vm1411_vm3, %v1689_v58, %v1691_v44  ;;  %v1933_v12 = vsel %vm1411_vm3, %v1930_v47, %v1932_v36 }
  0xec   : > { %v2200_v60 = vsel %vm217_vm0, %v2155_v26, 0.0  ;;  %v1056_v13 = vadd.f32 %v968_v1, %v815_v61  ;;  %v412_v19 = vmul.f32 %v2760_v20, %v3325_v24  ;;  %v477_v18 = vmul.f32 %v2766_v22, %v3412_v7 }
  0xed   : > { %v2201_v42 = vadd.f32 %v2200_v60, %v2199_v11  ;;  %v542_v34 = vmul.f32 %v2782_v37, %v3499_v33  ;;  %v615_v14 = vmul.f32 %v2729_v2, %v3325_v24  ;;  %v3515_v58 = vmul.f32 %v2729_v2, %v3345_v55 }
  0xee   : > { %v1297_v43 = vadd.f32 %v1209_v53, %v1056_v13  ;;  %v509_v4 = vadd.f32 %v477_v18, %v412_v19  ;;  %v857_v63 = vmul.f32 %v2772_v31, %v3412_v7  ;;  %v858_v3 = vmul.f32 %v2772_v31, %v3432_v41  ;;  %v3553_v13 = vld [vmem:[#allocation2 + $0x100] sm:$0x3] }
  0xef   : > { %v728_v28 = vrot.slane %v615_v14, 1  ;;  %v729_v51 = vrot.slane %v3515_v58, 1  ;;  %v1098_v47 = vmul.f32 %v2784_v38, %v3499_v33  ;;  %v3528_v57 = vmul.f32 %v2784_v38, %v3517_v17 }
  0xf0   : > { %v1539_v54 = vadd.f32 %v1451_v35, %v1297_v43  ;;  %v574_v50 = vadd.f32 %v542_v34, %v509_v4  ;;  %v969_v0 = vrot.slane %v857_v63, 1  ;;  %v970_v11 = vrot.slane %v858_v3, 1 }
  0xf1   : > { %v730_v29 = vsel %vm687_vm2, %v728_v28, %v729_v51  ;;  %v1210_v25 = vrot.slane %v1098_v47, 1  ;;  %v1211_v15 = vrot.slane %v3528_v57, 1  ;;  %v1339_v21 = vmul.f32 %v2733_v5, %v3325_v24 }
  0xf2   : > { %v1780_v46 = vadd.f32 %v1692_v52, %v1539_v54  ;;  %v816_v6 = vadd.f32 %v730_v29, %v574_v50  ;;  %v971_v30 = vsel %vm687_vm2, %v969_v0, %v970_v11  ;;  %v1340_v16 = vmul.f32 %v2733_v5, %v3345_v55 }
  0xf3   : > { %v1212_v23 = vsel %vm687_vm2, %v1210_v25, %v1211_v15  ;;  %v1452_v27 = vrot.slane %v1339_v21, 2  ;;  %v1581_v48 = vmul.f32 %v2774_v32, %v3412_v7  ;;  %v1582_v9 = vmul.f32 %v2774_v32, %v3432_v41 }
  0xf4   : > { %v2021_v40 = vadd.f32 %v1933_v12, %v1780_v46  ;;  %v1057_v8 = vadd.f32 %v971_v30, %v816_v6  ;;  %v1453_v24 = vrot.slane %v1340_v16, 2  ;;  %v1822_v59 = vmul.f32 %v2786_v39, %v3499_v33 }
  0xf5   : > { %v1693_v62 = vrot.slane %v1581_v48, 2  ;;  %v1694_v1 = vrot.slane %v1582_v9, 2  ;;  %v1823_v44 = vmul.f32 %v2786_v39, %v3517_v17  ;;  %v413_v36 = vmul.f32 %v2760_v20, %v3345_v55  ;;  %v3579_v48 = vld [vmem:[#allocation2 + $0x108] sm:$0xff] }
  0xf6   : > { %2053 = vst.msk [vmem:[%s2917_s14 + $0x78] sm:$0xff] %vm217_vm0, %v2021_v40  ;;  %v2099_v10 = vsel %vm217_vm0, %v2021_v40, 0.0  ;;  %v2156_v26 = vmul.f32 %v2021_v40, %v2021_v40  ;;  %v1298_v61 = vadd.f32 %v1212_v23, %v1057_v8  ;;  %v1454_v53 = vsel %vm1411_vm3, %v1452_v27, %v1453_v24 }
  0xf7   : > { %v2100_v35 = vadd.f32 %v2099_v10, %v2098_v49  ;;  %v1695_v52 = vsel %vm1411_vm3, %v1693_v62, %v1694_v1  ;;  %v1934_v12 = vrot.slane %v1822_v59, 2  ;;  %v1935_v60 = vrot.slane %v1823_v44, 2 }
  0xf8   : > { %v2202_v19 = vsel %vm217_vm0, %v2156_v26, 0.0  ;;  %v1540_v18 = vadd.f32 %v1454_v53, %v1298_v61  ;;  %v478_v55 = vmul.f32 %v2766_v22, %v3432_v41  ;;  %v543_v34 = vmul.f32 %v2782_v37, %v3517_v17  ;;  %v3597_v26 = vld [vmem:[#allocation2 + $0x110] sm:$0xff] }
  0xf9   : > { %v2203_v14 = vadd.f32 %v2202_v19, %v2201_v42  ;;  %v1936_v58 = vsel %vm1411_vm3, %v1934_v12, %v1935_v60  ;;  %v617_v49 = vmul.f32 %v2729_v2, %v3386_v56  ;;  %v859_v43 = vmul.f32 %v2772_v31, %v3473_v45 }
  0xfa   : > { %v1781_v4 = vadd.f32 %v1695_v52, %v1540_v18  ;;  %v510_v63 = vadd.f32 %v478_v55, %v413_v36  ;;  %v1100_v3 = vmul.f32 %v2784_v38, %v3553_v13  ;;  %v1341_v28 = vmul.f32 %v2733_v5, %v3386_v56 }
  0xfb   : > { %v731_v47 = vrot.slane %v617_v49, 1  ;;  %v972_v57 = vrot.slane %v859_v43, 1  ;;  %v1583_v42 = vmul.f32 %v2774_v32, %v3473_v45  ;;  %v1824_v54 = vmul.f32 %v2786_v39, %v3553_v13 }
  0xfc   : > { %v2022_v50 = vadd.f32 %v1936_v58, %v1781_v4  ;;  %v575_v0 = vadd.f32 %v543_v34, %v510_v63  ;;  %v1213_v29 = vrot.slane %v1100_v3, 1  ;;  %v1455_v25 = vrot.slane %v1341_v28, 2 }
  0xfd   : > { %v732_v21 = vsel %vm687_vm2, %v729_v51, %v731_v47  ;;  %v973_v46 = vsel %vm687_vm2, %v970_v11, %v972_v57  ;;  %v1696_v6 = vrot.slane %v1583_v42, 2  ;;  %v1937_v30 = vrot.slane %v1824_v54, 2 }
  0xfe   : > { %2054 = vst.msk [vmem:[%s2917_s14 + $0x80] sm:$0xff] %vm217_vm0, %v2022_v50  ;;  %v2101_v56 = vsel %vm217_vm0, %v2022_v50, 0.0  ;;  %v2157_v16 = vmul.f32 %v2022_v50, %v2022_v50  ;;  %v817_v23 = vadd.f32 %v732_v21, %v575_v0  ;;  %v1214_v27 = vsel %vm687_vm2, %v1211_v15, %v1213_v29 }
  0xff   : > { %v2102_v9 = vadd.f32 %v2101_v56, %v2100_v35  ;;  %v1456_v40 = vsel %vm1411_vm3, %v1453_v24, %v1455_v25  ;;  %v1697_v8 = vsel %vm1411_vm3, %v1694_v1, %v1696_v6  ;;  %v1938_v51 = vsel %vm1411_vm3, %v1935_v60, %v1937_v30 }
 0x100   : > { %v2204_v11 = vsel %vm217_vm0, %v2157_v16, 0.0  ;;  %v1058_v59 = vadd.f32 %v973_v46, %v817_v23  ;;  %v414_v62 = vmul.f32 %v2760_v20, %v3412_v7  ;;  %v479_v44 = vmul.f32 %v2766_v22, %v3499_v33 }
 0x101   : > { %v2205_v36 = vadd.f32 %v2204_v11, %v2203_v14  ;;  %v544_v15 = vmul.f32 %v2782_v37, %v3579_v48  ;;  %v618_v24 = vmul.f32 %v2729_v2, %v3412_v7  ;;  %v3595_v1 = vmul.f32 %v2729_v2, %v3432_v41 }
 0x102   : > { %v1299_v10 = vadd.f32 %v1214_v27, %v1058_v59  ;;  %v511_v61 = vadd.f32 %v479_v44, %v414_v62  ;;  %v860_v53 = vmul.f32 %v2772_v31, %v3499_v33  ;;  %v861_v35 = vmul.f32 %v2772_v31, %v3517_v17  ;;  %v3633_v59 = vld [vmem:[#allocation2 + $0x118] sm:$0x3] }
 0x103   : > { %v733_v52 = vrot.slane %v618_v24, 1  ;;  %v734_v12 = vrot.slane %v3595_v1, 1  ;;  %v1101_v60 = vmul.f32 %v2784_v38, %v3579_v48  ;;  %v3608_v19 = vmul.f32 %v2784_v38, %v3597_v26 }
 0x104   : > { %v1541_v18 = vadd.f32 %v1456_v40, %v1299_v10  ;;  %v576_v55 = vadd.f32 %v544_v15, %v511_v61  ;;  %v974_v34 = vrot.slane %v860_v53, 1  ;;  %v975_v14 = vrot.slane %v861_v35, 1 }
 0x105   : > { %v735_v58 = vsel %vm687_vm2, %v733_v52, %v734_v12  ;;  %v1215_v49 = vrot.slane %v1101_v60, 1  ;;  %v1216_v43 = vrot.slane %v3608_v19, 1  ;;  %v1342_v4 = vmul.f32 %v2733_v5, %v3412_v7 }
 0x106   : > { %v1782_v63 = vadd.f32 %v1697_v8, %v1541_v18  ;;  %v818_v3 = vadd.f32 %v735_v58, %v576_v55  ;;  %v976_v28 = vsel %vm687_vm2, %v974_v34, %v975_v14  ;;  %v1343_v47 = vmul.f32 %v2733_v5, %v3432_v41 }
 0x107   : > { %v1217_v57 = vsel %vm687_vm2, %v1215_v49, %v1216_v43  ;;  %v1457_v42 = vrot.slane %v1342_v4, 2  ;;  %v1584_v54 = vmul.f32 %v2774_v32, %v3499_v33  ;;  %v1585_v50 = vmul.f32 %v2774_v32, %v3517_v17 }
 0x108   : > { %v2023_v0 = vadd.f32 %v1938_v51, %v1782_v63  ;;  %v1059_v29 = vadd.f32 %v976_v28, %v818_v3  ;;  %v1458_v7 = vrot.slane %v1343_v47, 2  ;;  %v1825_v25 = vmul.f32 %v2786_v39, %v3579_v48 }
 0x109   : > { %v1698_v21 = vrot.slane %v1584_v54, 2  ;;  %v1699_v46 = vrot.slane %v1585_v50, 2  ;;  %v1826_v6 = vmul.f32 %v2786_v39, %v3597_v26  ;;  %v415_v30 = vmul.f32 %v2760_v20, %v3432_v41  ;;  %v3659_v54 = vld [vmem:[#allocation2 + $0x120] sm:$0xff] }
 0x10a   : > { %2055 = vst.msk [vmem:[%s2917_s14 + $0x88] sm:$0xff] %vm217_vm0, %v2023_v0  ;;  %v2103_v56 = vsel %vm217_vm0, %v2023_v0, 0.0  ;;  %v2158_v16 = vmul.f32 %v2023_v0, %v2023_v0  ;;  %v1300_v23 = vadd.f32 %v1217_v57, %v1059_v29  ;;  %v1459_v27 = vsel %vm1411_vm3, %v1457_v42, %v1458_v7 }
 0x10b   : > { %v2104_v40 = vadd.f32 %v2103_v56, %v2102_v9  ;;  %v1700_v8 = vsel %vm1411_vm3, %v1698_v21, %v1699_v46  ;;  %v1939_v51 = vrot.slane %v1825_v25, 2  ;;  %v1940_v11 = vrot.slane %v1826_v6, 2 }
 0x10c   : > { %v2206_v62 = vsel %vm217_vm0, %v2158_v16, 0.0  ;;  %v1542_v44 = vadd.f32 %v1459_v27, %v1300_v23  ;;  %v480_v41 = vmul.f32 %v2766_v22, %v3517_v17  ;;  %v545_v15 = vmul.f32 %v2782_v37, %v3597_v26  ;;  %v3677_v16 = vld [vmem:[#allocation2 + $0x128] sm:$0xff] }
 0x10d   : > { %v2207_v24 = vadd.f32 %v2206_v62, %v2205_v36  ;;  %v1941_v1 = vsel %vm1411_vm3, %v1939_v51, %v1940_v11  ;;  %v620_v9 = vmul.f32 %v2729_v2, %v3473_v45  ;;  %v862_v10 = vmul.f32 %v2772_v31, %v3553_v13 }
 0x10e   : > { %v1783_v61 = vadd.f32 %v1700_v8, %v1542_v44  ;;  %v512_v53 = vadd.f32 %v480_v41, %v415_v30  ;;  %v1103_v35 = vmul.f32 %v2784_v38, %v3633_v59  ;;  %v1344_v52 = vmul.f32 %v2733_v5, %v3473_v45 }
 0x10f   : > { %v736_v60 = vrot.slane %v620_v9, 1  ;;  %v977_v19 = vrot.slane %v862_v10, 1  ;;  %v1586_v36 = vmul.f32 %v2774_v32, %v3553_v13  ;;  %v1827_v18 = vmul.f32 %v2786_v39, %v3633_v59 }
 0x110   : > { %v2024_v55 = vadd.f32 %v1941_v1, %v1783_v61  ;;  %v577_v34 = vadd.f32 %v545_v15, %v512_v53  ;;  %v1218_v58 = vrot.slane %v1103_v35, 1  ;;  %v1460_v49 = vrot.slane %v1344_v52, 2 }
 0x111   : > { %v737_v4 = vsel %vm687_vm2, %v734_v12, %v736_v60  ;;  %v978_v63 = vsel %vm687_vm2, %v975_v14, %v977_v19  ;;  %v1701_v3 = vrot.slane %v1586_v36, 2  ;;  %v1942_v28 = vrot.slane %v1827_v18, 2 }
 0x112   : > { %2056 = vst.msk [vmem:[%s2917_s14 + $0x90] sm:$0xff] %vm217_vm0, %v2024_v55  ;;  %v2105_v45 = vsel %vm217_vm0, %v2024_v55, 0.0  ;;  %v2159_v47 = vmul.f32 %v2024_v55, %v2024_v55  ;;  %v819_v57 = vadd.f32 %v737_v4, %v577_v34  ;;  %v1219_v42 = vsel %vm687_vm2, %v1216_v43, %v1218_v58 }
 0x113   : > { %v2106_v50 = vadd.f32 %v2105_v45, %v2104_v40  ;;  %v1461_v0 = vsel %vm1411_vm3, %v1458_v7, %v1460_v49  ;;  %v1702_v29 = vsel %vm1411_vm3, %v1699_v46, %v1701_v3  ;;  %v1943_v12 = vsel %vm1411_vm3, %v1940_v11, %v1942_v28 }
 0x114   : > { %v2208_v14 = vsel %vm217_vm0, %v2159_v47, 0.0  ;;  %v1060_v25 = vadd.f32 %v978_v63, %v819_v57  ;;  %v416_v21 = vmul.f32 %v2760_v20, %v3499_v33  ;;  %v481_v6 = vmul.f32 %v2766_v22, %v3579_v48 }
 0x115   : > { %v2209_v30 = vadd.f32 %v2208_v14, %v2207_v24  ;;  %v546_v43 = vmul.f32 %v2782_v37, %v3659_v54  ;;  %v621_v7 = vmul.f32 %v2729_v2, %v3499_v33  ;;  %v3675_v46 = vmul.f32 %v2729_v2, %v3517_v17 }
 0x116   : > { %v1301_v56 = vadd.f32 %v1219_v42, %v1060_v25  ;;  %v513_v23 = vadd.f32 %v481_v6, %v416_v21  ;;  %v863_v27 = vmul.f32 %v2772_v31, %v3579_v48  ;;  %v864_v40 = vmul.f32 %v2772_v31, %v3597_v26  ;;  %v3713_v25 = vld [vmem:[#allocation2 + $0x130] sm:$0x3] }
 0x117   : > { %v738_v8 = vrot.slane %v621_v7, 1  ;;  %v739_v51 = vrot.slane %v3675_v46, 1  ;;  %v1104_v11 = vmul.f32 %v2784_v38, %v3659_v54  ;;  %v3688_v62 = vmul.f32 %v2784_v38, %v3677_v16 }
 0x118   : > { %v1543_v44 = vadd.f32 %v1461_v0, %v1301_v56  ;;  %v578_v41 = vadd.f32 %v546_v43, %v513_v23  ;;  %v979_v15 = vrot.slane %v863_v27, 1  ;;  %v980_v24 = vrot.slane %v864_v40, 1 }
 0x119   : > { %v740_v1 = vsel %vm687_vm2, %v738_v8, %v739_v51  ;;  %v1220_v9 = vrot.slane %v1104_v11, 1  ;;  %v1221_v10 = vrot.slane %v3688_v62, 1  ;;  %v1345_v61 = vmul.f32 %v2733_v5, %v3499_v33 }
 0x11a   : > { %v1784_v53 = vadd.f32 %v1702_v29, %v1543_v44  ;;  %v820_v35 = vadd.f32 %v740_v1, %v578_v41  ;;  %v981_v52 = vsel %vm687_vm2, %v979_v15, %v980_v24  ;;  %v1346_v60 = vmul.f32 %v2733_v5, %v3517_v17 }
 0x11b   : > { %v1222_v19 = vsel %vm687_vm2, %v1220_v9, %v1221_v10  ;;  %v1462_v36 = vrot.slane %v1345_v61, 2  ;;  %v1587_v18 = vmul.f32 %v2774_v32, %v3579_v48  ;;  %v1588_v55 = vmul.f32 %v2774_v32, %v3597_v26 }
 0x11c   : > { %v2025_v34 = vadd.f32 %v1943_v12, %v1784_v53  ;;  %v1061_v58 = vadd.f32 %v981_v52, %v820_v35  ;;  %v1463_v33 = vrot.slane %v1346_v60, 2  ;;  %v1828_v49 = vmul.f32 %v2786_v39, %v3659_v54 }
 0x11d   : > { %v1703_v4 = vrot.slane %v1587_v18, 2  ;;  %v1704_v63 = vrot.slane %v1588_v55, 2  ;;  %v1829_v3 = vmul.f32 %v2786_v39, %v3677_v16  ;;  %v417_v28 = vmul.f32 %v2760_v20, %v3517_v17  ;;  %v3739_v18 = vld [vmem:[#allocation2 + $0x138] sm:$0xff] }
 0x11e   : > { %2057 = vst.msk [vmem:[%s2917_s14 + $0x98] sm:$0xff] %vm217_vm0, %v2025_v34  ;;  %v2107_v45 = vsel %vm217_vm0, %v2025_v34, 0.0  ;;  %v2160_v47 = vmul.f32 %v2025_v34, %v2025_v34  ;;  %v1302_v57 = vadd.f32 %v1222_v19, %v1061_v58  ;;  %v1464_v42 = vsel %vm1411_vm3, %v1462_v36, %v1463_v33 }
 0x11f   : > { %v2108_v0 = vadd.f32 %v2107_v45, %v2106_v50  ;;  %v1705_v29 = vsel %vm1411_vm3, %v1703_v4, %v1704_v63  ;;  %v1944_v12 = vrot.slane %v1828_v49, 2  ;;  %v1945_v14 = vrot.slane %v1829_v3, 2 }
 0x120   : > { %v2210_v21 = vsel %vm217_vm0, %v2160_v47, 0.0  ;;  %v1544_v6 = vadd.f32 %v1464_v42, %v1302_v57  ;;  %v482_v17 = vmul.f32 %v2766_v22, %v3597_v26  ;;  %v547_v43 = vmul.f32 %v2782_v37, %v3677_v16  ;;  %v3757_v47 = vld [vmem:[#allocation2 + $0x140] sm:$0xff] }
 0x121   : > { %v2211_v7 = vadd.f32 %v2210_v21, %v2209_v30  ;;  %v1946_v46 = vsel %vm1411_vm3, %v1944_v12, %v1945_v14  ;;  %v623_v50 = vmul.f32 %v2729_v2, %v3553_v13  ;;  %v865_v56 = vmul.f32 %v2772_v31, %v3633_v59 }
 0x122   : > { %v1785_v23 = vadd.f32 %v1705_v29, %v1544_v6  ;;  %v514_v27 = vadd.f32 %v482_v17, %v417_v28  ;;  %v1106_v40 = vmul.f32 %v2784_v38, %v3713_v25  ;;  %v1347_v8 = vmul.f32 %v2733_v5, %v3553_v13 }
 0x123   : > { %v741_v11 = vrot.slane %v623_v50, 1  ;;  %v982_v62 = vrot.slane %v865_v56, 1  ;;  %v1589_v30 = vmul.f32 %v2774_v32, %v3633_v59  ;;  %v1830_v44 = vmul.f32 %v2786_v39, %v3713_v25 }
 0x124   : > { %v2026_v41 = vadd.f32 %v1946_v46, %v1785_v23  ;;  %v579_v15 = vadd.f32 %v547_v43, %v514_v27  ;;  %v1223_v1 = vrot.slane %v1106_v40, 1  ;;  %v1465_v9 = vrot.slane %v1347_v8, 2 }
 0x125   : > { %v742_v61 = vsel %vm687_vm2, %v739_v51, %v741_v11  ;;  %v983_v53 = vsel %vm687_vm2, %v980_v24, %v982_v62  ;;  %v1706_v35 = vrot.slane %v1589_v30, 2  ;;  %v1947_v52 = vrot.slane %v1830_v44, 2 }
 0x126   : > { %2058 = vst.msk [vmem:[%s2917_s14 + $0xa0] sm:$0xff] %vm217_vm0, %v2026_v41  ;;  %v2109_v13 = vsel %vm217_vm0, %v2026_v41, 0.0  ;;  %v2161_v60 = vmul.f32 %v2026_v41, %v2026_v41  ;;  %v821_v19 = vadd.f32 %v742_v61, %v579_v15  ;;  %v1224_v36 = vsel %vm687_vm2, %v1221_v10, %v1223_v1 }
 0x127   : > { %v2110_v55 = vadd.f32 %v2109_v13, %v2108_v0  ;;  %v1466_v34 = vsel %vm1411_vm3, %v1463_v33, %v1465_v9  ;;  %v1707_v58 = vsel %vm1411_vm3, %v1704_v63, %v1706_v35  ;;  %v1948_v51 = vsel %vm1411_vm3, %v1945_v14, %v1947_v52 }
 0x128   : > { %v2212_v24 = vsel %vm217_vm0, %v2161_v60, 0.0  ;;  %v1062_v49 = vadd.f32 %v983_v53, %v821_v19  ;;  %v418_v4 = vmul.f32 %v2760_v20, %v3579_v48  ;;  %v483_v3 = vmul.f32 %v2766_v22, %v3659_v54 }
 0x129   : > { %v2213_v28 = vadd.f32 %v2212_v24, %v2211_v7  ;;  %v548_v10 = vmul.f32 %v2782_v37, %v3739_v18  ;;  %v624_v33 = vmul.f32 %v2729_v2, %v3579_v48  ;;  %v3755_v63 = vmul.f32 %v2729_v2, %v3597_v26 }
 0x12a   : > { %v1303_v45 = vadd.f32 %v1224_v36, %v1062_v49  ;;  %v515_v57 = vadd.f32 %v483_v3, %v418_v4  ;;  %v866_v42 = vmul.f32 %v2772_v31, %v3659_v54  ;;  %v867_v0 = vmul.f32 %v2772_v31, %v3677_v16  ;;  %v3793_v49 = vld [vmem:[#allocation2 + $0x148] sm:$0x3] }
 0x12b   : > { %v743_v29 = vrot.slane %v624_v33, 1  ;;  %v744_v12 = vrot.slane %v3755_v63, 1  ;;  %v1107_v14 = vmul.f32 %v2784_v38, %v3739_v18  ;;  %v3768_v21 = vmul.f32 %v2784_v38, %v3757_v47 }
 0x12c   : > { %v1545_v6 = vadd.f32 %v1466_v34, %v1303_v45  ;;  %v580_v17 = vadd.f32 %v548_v10, %v515_v57  ;;  %v984_v43 = vrot.slane %v866_v42, 1  ;;  %v985_v7 = vrot.slane %v867_v0, 1 }
 0x12d   : > { %v745_v46 = vsel %vm687_vm2, %v743_v29, %v744_v12  ;;  %v1225_v50 = vrot.slane %v1107_v14, 1  ;;  %v1226_v56 = vrot.slane %v3768_v21, 1  ;;  %v1348_v23 = vmul.f32 %v2733_v5, %v3579_v48 }
 0x12e   : > { %v1786_v27 = vadd.f32 %v1707_v58, %v1545_v6  ;;  %v822_v40 = vadd.f32 %v745_v46, %v580_v17  ;;  %v986_v8 = vsel %vm687_vm2, %v984_v43, %v985_v7  ;;  %v1349_v11 = vmul.f32 %v2733_v5, %v3597_v26 }
 0x12f   : > { %v1227_v62 = vsel %vm687_vm2, %v1225_v50, %v1226_v56  ;;  %v1467_v30 = vrot.slane %v1348_v23, 2  ;;  %v1590_v44 = vmul.f32 %v2774_v32, %v3659_v54  ;;  %v1591_v41 = vmul.f32 %v2774_v32, %v3677_v16 }
 0x130   : > { %v2027_v15 = vadd.f32 %v1948_v51, %v1786_v27  ;;  %v1063_v1 = vadd.f32 %v986_v8, %v822_v40  ;;  %v1468_v48 = vrot.slane %v1349_v11, 2  ;;  %v1831_v9 = vmul.f32 %v2786_v39, %v3739_v18 }
 0x131   : > { %v1708_v61 = vrot.slane %v1590_v44, 2  ;;  %v1709_v53 = vrot.slane %v1591_v41, 2  ;;  %v1832_v35 = vmul.f32 %v2786_v39, %v3757_v47  ;;  %v419_v52 = vmul.f32 %v2760_v20, %v3597_v26  ;;  %v3819_v44 = vld [vmem:[#allocation2 + $0x150] sm:$0xff] }
 0x132   : > { %2059 = vst.msk [vmem:[%s2917_s14 + $0xa8] sm:$0xff] %vm217_vm0, %v2027_v15  ;;  %v2111_v13 = vsel %vm217_vm0, %v2027_v15, 0.0  ;;  %v2162_v60 = vmul.f32 %v2027_v15, %v2027_v15  ;;  %v1304_v19 = vadd.f32 %v1227_v62, %v1063_v1  ;;  %v1469_v36 = vsel %vm1411_vm3, %v1467_v30, %v1468_v48 }
 0x133   : > { %v2112_v34 = vadd.f32 %v2111_v13, %v2110_v55  ;;  %v1710_v58 = vsel %vm1411_vm3, %v1708_v61, %v1709_v53  ;;  %v1949_v51 = vrot.slane %v1831_v9, 2  ;;  %v1950_v24 = vrot.slane %v1832_v35, 2 }
 0x134   : > { %v2214_v4 = vsel %vm217_vm0, %v2162_v60, 0.0  ;;  %v1546_v3 = vadd.f32 %v1469_v36, %v1304_v19  ;;  %v484_v26 = vmul.f32 %v2766_v22, %v3677_v16  ;;  %v549_v10 = vmul.f32 %v2782_v37, %v3757_v47  ;;  %v3837_v60 = vld [vmem:[#allocation2 + $0x158] sm:$0xff] }
 0x135   : > { %v2215_v33 = vadd.f32 %v2214_v4, %v2213_v28  ;;  %v1951_v63 = vsel %vm1411_vm3, %v1949_v51, %v1950_v24  ;;  %v626_v55 = vmul.f32 %v2729_v2, %v3633_v59  ;;  %v868_v45 = vmul.f32 %v2772_v31, %v3713_v25 }
 0x136   : > { %v1787_v57 = vadd.f32 %v1710_v58, %v1546_v3  ;;  %v516_v42 = vadd.f32 %v484_v26, %v419_v52  ;;  %v1109_v0 = vmul.f32 %v2784_v38, %v3793_v49  ;;  %v1350_v29 = vmul.f32 %v2733_v5, %v3633_v59 }
 0x137   : > { %v746_v14 = vrot.slane %v626_v55, 1  ;;  %v987_v21 = vrot.slane %v868_v45, 1  ;;  %v1592_v28 = vmul.f32 %v2774_v32, %v3713_v25  ;;  %v1833_v6 = vmul.f32 %v2786_v39, %v3793_v49 }
 0x138   : > { %v2028_v17 = vadd.f32 %v1951_v63, %v1787_v57  ;;  %v581_v43 = vadd.f32 %v549_v10, %v516_v42  ;;  %v1228_v46 = vrot.slane %v1109_v0, 1  ;;  %v1470_v50 = vrot.slane %v1350_v29, 2 }
 0x139   : > { %v747_v23 = vsel %vm687_vm2, %v744_v12, %v746_v14  ;;  %v988_v27 = vsel %vm687_vm2, %v985_v7, %v987_v21  ;;  %v1711_v40 = vrot.slane %v1592_v28, 2  ;;  %v1952_v8 = vrot.slane %v1833_v6, 2 }
 0x13a   : > { %2060 = vst.msk [vmem:[%s2917_s14 + $0xb0] sm:$0xff] %vm217_vm0, %v2028_v17  ;;  %v2113_v59 = vsel %vm217_vm0, %v2028_v17, 0.0  ;;  %v2163_v11 = vmul.f32 %v2028_v17, %v2028_v17  ;;  %v823_v62 = vadd.f32 %v747_v23, %v581_v43  ;;  %v1229_v30 = vsel %vm687_vm2, %v1226_v56, %v1228_v46 }
 0x13b   : > { %v2114_v41 = vadd.f32 %v2113_v59, %v2112_v34  ;;  %v1471_v15 = vsel %vm1411_vm3, %v1468_v48, %v1470_v50  ;;  %v1712_v1 = vsel %vm1411_vm3, %v1709_v53, %v1711_v40  ;;  %v1953_v12 = vsel %vm1411_vm3, %v1950_v24, %v1952_v8 }
 0x13c   : > { %v2216_v7 = vsel %vm217_vm0, %v2163_v11, 0.0  ;;  %v1064_v9 = vadd.f32 %v988_v27, %v823_v62  ;;  %v420_v61 = vmul.f32 %v2760_v20, %v3659_v54  ;;  %v485_v35 = vmul.f32 %v2766_v22, %v3739_v18 }
 0x13d   : > { %v2217_v52 = vadd.f32 %v2216_v7, %v2215_v33  ;;  %v550_v56 = vmul.f32 %v2782_v37, %v3819_v44  ;;  %v627_v48 = vmul.f32 %v2729_v2, %v3659_v54  ;;  %v3835_v53 = vmul.f32 %v2729_v2, %v3677_v16 }
 0x13e   : > { %v1305_v13 = vadd.f32 %v1229_v30, %v1064_v9  ;;  %v517_v19 = vadd.f32 %v485_v35, %v420_v61  ;;  %v869_v36 = vmul.f32 %v2772_v31, %v3739_v18  ;;  %v870_v34 = vmul.f32 %v2772_v31, %v3757_v47  ;;  %v3875_v9 = vld [vmem:[#allocation2 + $0x160] sm:$0x3] }
 0x13f   : > { %v748_v58 = vrot.slane %v627_v48, 1  ;;  %v749_v51 = vrot.slane %v3835_v53, 1  ;;  %v1110_v24 = vmul.f32 %v2784_v38, %v3819_v44  ;;  %v3848_v4 = vmul.f32 %v2784_v38, %v3837_v60 }
 0x140   : > { %v1547_v3 = vadd.f32 %v1471_v15, %v1305_v13  ;;  %v582_v26 = vadd.f32 %v550_v56, %v517_v19  ;;  %v989_v10 = vrot.slane %v869_v36, 1  ;;  %v990_v33 = vrot.slane %v870_v34, 1 }
 0x141   : > { %v750_v63 = vsel %vm687_vm2, %v748_v58, %v749_v51  ;;  %v1230_v55 = vrot.slane %v1110_v24, 1  ;;  %v1231_v45 = vrot.slane %v3848_v4, 1  ;;  %v1351_v57 = vmul.f32 %v2733_v5, %v3659_v54 }
 0x142   : > { %v1788_v42 = vadd.f32 %v1712_v1, %v1547_v3  ;;  %v824_v0 = vadd.f32 %v750_v63, %v582_v26  ;;  %v991_v29 = vsel %vm687_vm2, %v989_v10, %v990_v33  ;;  %v1352_v14 = vmul.f32 %v2733_v5, %v3677_v16 }
 0x143   : > { %v1232_v21 = vsel %vm687_vm2, %v1230_v55, %v1231_v45  ;;  %v1472_v28 = vrot.slane %v1351_v57, 2  ;;  %v1593_v6 = vmul.f32 %v2774_v32, %v3739_v18  ;;  %v1594_v17 = vmul.f32 %v2774_v32, %v3757_v47 }
 0x144   : > { %v2029_v43 = vadd.f32 %v1953_v12, %v1788_v42  ;;  %v1065_v46 = vadd.f32 %v991_v29, %v824_v0  ;;  %v1473_v54 = vrot.slane %v1352_v14, 2  ;;  %v1834_v50 = vmul.f32 %v2786_v39, %v3819_v44  ;;  %v3904_v14 = vld [vmem:[#allocation2 + $0x168] sm:$0xff] }
 0x145   : > { %v1713_v23 = vrot.slane %v1593_v6, 2  ;;  %v1714_v27 = vrot.slane %v1594_v17, 2  ;;  %v1835_v40 = vmul.f32 %v2786_v39, %v3837_v60  ;;  %v421_v8 = vmul.f32 %v2760_v20, %v3677_v16 }
 0x146   : > { %2061 = vst.msk [vmem:[%s2917_s14 + $0xb8] sm:$0xff] %vm217_vm0, %v2029_v43  ;;  %v2115_v59 = vsel %vm217_vm0, %v2029_v43, 0.0  ;;  %v2164_v11 = vmul.f32 %v2029_v43, %v2029_v43  ;;  %v1306_v62 = vadd.f32 %v1232_v21, %v1065_v46  ;;  %v1474_v30 = vsel %vm1411_vm3, %v1472_v28, %v1473_v54 }
 0x147   : > { %v3872_v15 = vadd.f32 %v2115_v59, %v2114_v41  ;;  %v1715_v1 = vsel %vm1411_vm3, %v1713_v23, %v1714_v27  ;;  %v1954_v12 = vrot.slane %v1834_v50, 2  ;;  %v1955_v7 = vrot.slane %v1835_v40, 2  ;;  %v3922_v23 = vld [vmem:[#allocation2 + $0x170] sm:$0xff] }
 0x148   : > { %v2218_v61 = vsel %vm217_vm0, %v2164_v11, 0.0  ;;  %v1548_v35 = vadd.f32 %v1474_v30, %v1306_v62  ;;  %v486_v16 = vmul.f32 %v2766_v22, %v3757_v47  ;;  %v551_v56 = vmul.f32 %v2782_v37, %v3837_v60 }
 0x149   : > { %v3882_v48 = vadd.f32 %v2218_v61, %v2217_v52  ;;  %v1956_v41 = vsel %vm1411_vm3, %v1954_v12, %v1955_v7  ;;  %v629_v53 = vmul.f32 %v2729_v2, %v3713_v25  ;;  %v871_v13 = vmul.f32 %v2772_v31, %v3793_v49 }
 0x14a   : > { %v1789_v19 = vadd.f32 %v1715_v1, %v1548_v35  ;;  %v518_v36 = vadd.f32 %v486_v16, %v421_v8  ;;  %v1112_v34 = vmul.f32 %v2784_v38, %v3875_v9  ;;  %v1353_v58 = vmul.f32 %v2733_v5, %v3713_v25 }
 0x14b   : > { %v751_v24 = vrot.slane %v629_v53, 1  ;;  %v992_v52 = vrot.slane %v871_v13, 1  ;;  %v1595_v4 = vmul.f32 %v2774_v32, %v3793_v49  ;;  %v1836_v3 = vmul.f32 %v2786_v39, %v3875_v9 }
 0x14c   : > { %v3897_v26 = vadd.f32 %v1956_v41, %v1789_v19  ;;  %v583_v10 = vadd.f32 %v551_v56, %v518_v36  ;;  %v1233_v63 = vrot.slane %v1112_v34, 1  ;;  %v1475_v55 = vrot.slane %v1353_v58, 2 }
 0x14d   : > { %v752_v57 = vsel %vm687_vm2, %v749_v51, %v751_v24  ;;  %v993_v42 = vsel %vm687_vm2, %v990_v33, %v992_v52  ;;  %v1716_v0 = vrot.slane %v1595_v4, 2  ;;  %v1957_v29 = vrot.slane %v1836_v3, 2 }
 0x14e   : > { %2062 = vst.msk [vmem:[%s2917_s14 + $0xc0] sm:$0xff] %vm217_vm0, %v3897_v26  ;;  %v825_v25 = vadd.f32 %v752_v57, %v583_v10  ;;  %v1234_v21 = vsel %vm687_vm2, %v1231_v45, %v1233_v63  ;;  %v1476_v28 = vsel %vm1411_vm3, %v1473_v54, %v1475_v55  ;;  %v422_v51 = vmul.f32 %v2760_v20, %v3739_v18 }
 0x14f   : > { %v1717_v17 = vsel %vm1411_vm3, %v1714_v27, %v1716_v0  ;;  %v487_v33 = vmul.f32 %v2766_v22, %v3819_v44  ;;  %v1958_v43 = vsel %vm1411_vm3, %v1955_v7, %v1957_v29  ;;  %v552_v46 = vmul.f32 %v2782_v37, %v3904_v14 }
 0x150   : > { %v1066_v6 = vadd.f32 %v993_v42, %v825_v25  ;;  %v630_v50 = vmul.f32 %v2729_v2, %v3739_v18  ;;  %v3920_v45 = vmul.f32 %v2729_v2, %v3757_v47  ;;  %v872_v40 = vmul.f32 %v2772_v31, %v3819_v44 }
 0x151   : > { %v519_v27 = vadd.f32 %v487_v33, %v422_v51  ;;  %v873_v8 = vmul.f32 %v2772_v31, %v3837_v60  ;;  %v1113_v62 = vmul.f32 %v2784_v38, %v3904_v14  ;;  %v3933_v30 = vmul.f32 %v2784_v38, %v3922_v23 }
 0x152   : > { %v1307_v54 = vadd.f32 %v1234_v21, %v1066_v6  ;;  %v753_v59 = vrot.slane %v630_v50, 1  ;;  %v754_v11 = vrot.slane %v3920_v45, 1  ;;  %v994_v7 = vrot.slane %v872_v40, 1  ;;  %v3960_v6 = vld [vmem:[#allocation2 + $0x178] sm:$0x3] }
 0x153   : > { %v584_v12 = vadd.f32 %v552_v46, %v519_v27  ;;  %v995_v61 = vrot.slane %v873_v8, 1  ;;  %v1235_v16 = vrot.slane %v1113_v62, 1  ;;  %v1236_v56 = vrot.slane %v3933_v30, 1 }
 0x154   : > { %v1549_v1 = vadd.f32 %v1476_v28, %v1307_v54  ;;  %v755_v35 = vsel %vm687_vm2, %v753_v59, %v754_v11  ;;  %v1354_v41 = vmul.f32 %v2733_v5, %v3739_v18  ;;  %v1355_v36 = vmul.f32 %v2733_v5, %v3757_v47 }
 0x155   : > { %v826_v13 = vadd.f32 %v755_v35, %v584_v12  ;;  %v996_v19 = vsel %vm687_vm2, %v994_v7, %v995_v61  ;;  %v1237_v34 = vsel %vm687_vm2, %v1235_v16, %v1236_v56  ;;  %v1596_v24 = vmul.f32 %v2774_v32, %v3819_v44 }
 0x156   : > { %v1790_v53 = vadd.f32 %v1717_v17, %v1549_v1  ;;  %v1477_v58 = vrot.slane %v1354_v41, 2  ;;  %v1597_v52 = vmul.f32 %v2774_v32, %v3837_v60  ;;  %v1478_v3 = vrot.slane %v1355_v36, 2 }
 0x157   : > { %v1067_v18 = vadd.f32 %v996_v19, %v826_v13  ;;  %v1837_v10 = vmul.f32 %v2786_v39, %v3904_v14  ;;  %v1718_v63 = vrot.slane %v1596_v24, 2  ;;  %v1838_v57 = vmul.f32 %v2786_v39, %v3922_v23 }
 0x158   : > { %v3947_v4 = vadd.f32 %v1958_v43, %v1790_v53  ;;  %v1719_v55 = vrot.slane %v1597_v52, 2  ;;  %v1479_v0 = vsel %vm1411_vm3, %v1477_v58, %v1478_v3  ;;  %v423_v29 = vmul.f32 %v2760_v20, %v3757_v47 }
 0x159   : > { %v1308_v42 = vadd.f32 %v1237_v34, %v1067_v18  ;;  %v1959_v21 = vrot.slane %v1837_v10, 2  ;;  %v1960_v28 = vrot.slane %v1838_v57, 2  ;;  %v2117_v17 = vsel %vm217_vm0, %v3897_v26, 0.0  ;;  %v3992_v34 = vld [vmem:[#allocation2 + $0x180] sm:$0xff] }
 0x15a   : > { %2063 = vst.msk [vmem:[%s2917_s14 + $0xc8] sm:$0xff] %vm217_vm0, %v3947_v4  ;;  %v1720_v25 = vsel %vm1411_vm3, %v1718_v63, %v1719_v55  ;;  %v488_v33 = vmul.f32 %v2766_v22, %v3837_v60  ;;  %v553_v43 = vmul.f32 %v2782_v37, %v3922_v23  ;;  %v2165_v46 = vmul.f32 %v3897_v26, %v3897_v26 }
 0x15b   : > { %v1550_v51 = vadd.f32 %v1479_v0, %v1308_v42  ;;  %v1961_v47 = vsel %vm1411_vm3, %v1959_v21, %v1960_v28  ;;  %v632_v50 = vmul.f32 %v2729_v2, %v3793_v49  ;;  %v874_v45 = vmul.f32 %v2772_v31, %v3875_v9 }
 0x15c   : > { %v520_v27 = vadd.f32 %v488_v33, %v423_v29  ;;  %v1115_v40 = vmul.f32 %v2784_v38, %v3960_v6  ;;  %v1356_v8 = vmul.f32 %v2733_v5, %v3793_v49  ;;  %v1598_v26 = vmul.f32 %v2774_v32, %v3875_v9 }
 0x15d   : > { %v1791_v54 = vadd.f32 %v1720_v25, %v1550_v51  ;;  %v756_v59 = vrot.slane %v632_v50, 1  ;;  %v997_v62 = vrot.slane %v874_v45, 1  ;;  %v1839_v30 = vmul.f32 %v2786_v39, %v3960_v6 }
 0x15e   : > { %v585_v12 = vadd.f32 %v553_v43, %v520_v27  ;;  %v1238_v7 = vrot.slane %v1115_v40, 1  ;;  %v1480_v35 = vrot.slane %v1356_v8, 2  ;;  %v1721_v53 = vrot.slane %v1598_v26, 2 }
 0x15f   : > { %v3983_v1 = vadd.f32 %v1961_v47, %v1791_v54  ;;  %v757_v16 = vsel %vm687_vm2, %v754_v11, %v756_v59  ;;  %v998_v41 = vsel %vm687_vm2, %v995_v61, %v997_v62  ;;  %v1962_v13 = vrot.slane %v1839_v30, 2 }
 0x160   : > { %v2118_v49 = vadd.f32 %v2117_v17, %v3872_v15  ;;  %v2220_v19 = vsel %vm217_vm0, %v2165_v46, 0.0  ;;  %v827_v36 = vadd.f32 %v757_v16, %v585_v12  ;;  %v2166_v24 = vmul.f32 %v3947_v4, %v3947_v4 }
 0x161   : > { %2064 = vst.msk [vmem:[%s2917_s14 + $0xd0] sm:$0xff] %vm217_vm0, %v3983_v1  ;;  %v2221_v58 = vadd.f32 %v2220_v19, %v3882_v48  ;;  %v1239_v11 = vsel %vm687_vm2, %v1236_v56, %v1238_v7  ;;  %v1481_v61 = vsel %vm1411_vm3, %v1478_v3, %v1480_v35  ;;  %v1722_v15 = vsel %vm1411_vm3, %v1719_v55, %v1721_v53  ;;  %v4013_v55 = vld [vmem:[#allocation2 + $0x188] sm:$0xff] }
 0x162   : > { %v1068_v52 = vadd.f32 %v998_v41, %v827_v36  ;;  %v424_v18 = vmul.f32 %v2760_v20, %v3819_v44  ;;  %v489_v10 = vmul.f32 %v2766_v22, %v3904_v14  ;;  %v1963_v63 = vsel %vm1411_vm3, %v1960_v28, %v1962_v13 }
 0x163   : > { %v554_v48 = vmul.f32 %v2782_v37, %v3992_v34  ;;  %v633_v57 = vmul.f32 %v2729_v2, %v3819_v44  ;;  %v4011_v56 = vmul.f32 %v2729_v2, %v3837_v60  ;;  %v875_v0 = vmul.f32 %v2772_v31, %v3904_v14 }
 0x164   : > { %v1309_v3 = vadd.f32 %v1239_v11, %v1068_v52  ;;  %v521_v42 = vadd.f32 %v489_v10, %v424_v18  ;;  %v876_v29 = vmul.f32 %v2772_v31, %v3922_v23  ;;  %v1116_v28 = vmul.f32 %v2784_v38, %v3992_v34 }
 0x165   : > { %v758_v25 = vrot.slane %v633_v57, 1  ;;  %v759_v21 = vrot.slane %v4011_v56, 1  ;;  %v4024_v17 = vmul.f32 %v2784_v38, %v4013_v55  ;;  %v999_v43 = vrot.slane %v875_v0, 1 }
 0x166   : > { %v1551_v51 = vadd.f32 %v1481_v61, %v1309_v3  ;;  %v586_v33 = vadd.f32 %v554_v48, %v521_v42  ;;  %v1000_v46 = vrot.slane %v876_v29, 1  ;;  %v1240_v50 = vrot.slane %v1116_v28, 1 }
 0x167   : > { %v760_v47 = vsel %vm687_vm2, %v758_v25, %v759_v21  ;;  %v1241_v45 = vrot.slane %v4024_v17, 1  ;;  %v1357_v54 = vmul.f32 %v2733_v5, %v3819_v44  ;;  %v1358_v59 = vmul.f32 %v2733_v5, %v3837_v60 }
 0x168   : > { %v1792_v27 = vadd.f32 %v1722_v15, %v1551_v51  ;;  %v828_v40 = vadd.f32 %v760_v47, %v586_v33  ;;  %v1001_v8 = vsel %vm687_vm2, %v999_v43, %v1000_v46  ;;  %v1599_v30 = vmul.f32 %v2774_v32, %v3904_v14 }
 0x169   : > { %v1242_v62 = vsel %vm687_vm2, %v1240_v50, %v1241_v45  ;;  %v1482_v26 = vrot.slane %v1357_v54, 2  ;;  %v1600_v12 = vmul.f32 %v2774_v32, %v3922_v23  ;;  %v1483_v35 = vrot.slane %v1358_v59, 2 }
 0x16a   : > { %v4038_v7 = vadd.f32 %v1963_v63, %v1792_v27  ;;  %v1069_v44 = vadd.f32 %v1001_v8, %v828_v40  ;;  %v1840_v16 = vmul.f32 %v2786_v39, %v3992_v34  ;;  %v2119_v41 = vsel %vm217_vm0, %v3947_v4, 0.0  ;;  %v4054_v63 = vld [vmem:[#allocation2 + $0x190] sm:$0x3] }
 0x16b   : > { %v1723_v53 = vrot.slane %v1599_v30, 2  ;;  %v1724_v13 = vrot.slane %v1600_v12, 2  ;;  %v1841_v19 = vmul.f32 %v2786_v39, %v4013_v55  ;;  %v2120_v36 = vadd.f32 %v2119_v41, %v2118_v49  ;;  %v389_v30 = vld [vmem:[#allocation2 + $0x198] sm:$0xff] }
 0x16c   : > { %2065 = vst.msk [vmem:[%s2917_s14 + $0xd8] sm:$0xff] %vm217_vm0, %v4038_v7  ;;  %v1310_v11 = vadd.f32 %v1242_v62, %v1069_v44  ;;  %v1484_v61 = vsel %vm1411_vm3, %v1482_v26, %v1483_v35  ;;  %v425_v52 = vmul.f32 %v2760_v20, %v3837_v60  ;;  %v2222_v15 = vsel %vm217_vm0, %v2166_v24, 0.0 }
 0x16d   : > { %v1725_v18 = vsel %vm1411_vm3, %v1723_v53, %v1724_v13  ;;  %v1964_v4 = vrot.slane %v1840_v16, 2  ;;  %v1965_v10 = vrot.slane %v1841_v19, 2  ;;  %v2223_v48 = vadd.f32 %v2222_v15, %v2221_v58 }
 0x16e   : > { %v1552_v57 = vadd.f32 %v1484_v61, %v1310_v11  ;;  %v490_v49 = vmul.f32 %v2766_v22, %v3922_v23  ;;  %v555_v56 = vmul.f32 %v2782_v37, %v4013_v55  ;;  %v2167_v3 = vmul.f32 %v3983_v1, %v3983_v1 }
 0x16f   : > { %v1966_v60 = vsel %vm1411_vm3, %v1964_v4, %v1965_v10  ;;  %v635_v24 = vmul.f32 %v2729_v2, %v3875_v9  ;;  %v877_v42 = vmul.f32 %v2772_v31, %v3960_v6  ;;  %v1118_v29 = vmul.f32 %v2784_v38, %v4054_v63 }
 0x170   : > { %v1793_v0 = vadd.f32 %v1725_v18, %v1552_v57  ;;  %v522_v58 = vadd.f32 %v490_v49, %v425_v52  ;;  %v1359_v25 = vmul.f32 %v2733_v5, %v3875_v9  ;;  %v1601_v51 = vmul.f32 %v2774_v32, %v3960_v6 }
 0x171   : > { %v761_v28 = vrot.slane %v635_v24, 1  ;;  %v1002_v17 = vrot.slane %v877_v42, 1  ;;  %v1842_v33 = vmul.f32 %v2786_v39, %v4054_v63  ;;  %v1243_v50 = vrot.slane %v1118_v29, 1 }
 0x172   : > { %v4075_v43 = vadd.f32 %v1966_v60, %v1793_v0  ;;  %v587_v47 = vadd.f32 %v555_v56, %v522_v58  ;;  %v1485_v54 = vrot.slane %v1359_v25, 2  ;;  %v1726_v8 = vrot.slane %v1601_v51, 2 }
 0x173   : > { %v762_v27 = vsel %vm687_vm2, %v759_v21, %v761_v28  ;;  %v1003_v40 = vsel %vm687_vm2, %v1000_v46, %v1002_v17  ;;  %v1967_v59 = vrot.slane %v1842_v33, 2  ;;  %v2121_v9 = vsel %vm217_vm0, %v3983_v1, 0.0 }
 0x174   : > { %v2224_v62 = vsel %vm217_vm0, %v2167_v3, 0.0  ;;  %2066 = vst.msk [vmem:[%s2917_s14 + $0xe0] sm:$0xff] %vm217_vm0, %v4075_v43  ;;  %v829_v26 = vadd.f32 %v762_v27, %v587_v47  ;;  %v2122_v12 = vadd.f32 %v2121_v9, %v2120_v36  ;;  %v1244_v16 = vsel %vm687_vm2, %v1241_v45, %v1243_v50  ;;  %v390_v45 = vld [vmem:[#allocation2 + $0x1a0] sm:$0xff] }
 0x175   : > { %v4085_v44 = vadd.f32 %v2224_v62, %v2223_v48  ;;  %v1486_v46 = vsel %vm1411_vm3, %v1483_v35, %v1485_v54  ;;  %v426_v41 = vmul.f32 %v2760_v20, %v3904_v14  ;;  %v491_v1 = vmul.f32 %v2766_v22, %v3992_v34 }
 0x176   : > { %v1070_v21 = vadd.f32 %v1003_v40, %v829_v26  ;;  %v1727_v53 = vsel %vm1411_vm3, %v1724_v13, %v1726_v8  ;;  %v1968_v19 = vsel %vm1411_vm3, %v1965_v10, %v1967_v59  ;;  %v556_v11 = vmul.f32 %v2782_v37, %v389_v30 }
 0x177   : > { %v636_v36 = vmul.f32 %v2729_v2, %v3904_v14  ;;  %v523_v52 = vadd.f32 %v491_v1, %v426_v41  ;;  %v637_v35 = vmul.f32 %v2729_v2, %v3922_v23  ;;  %v878_v15 = vmul.f32 %v2772_v31, %v3992_v34  ;;  %v391_v1 = vld [vmem:[#allocation2 + $0x1a8] sm:$0x3] }
 0x178   : > { %v1311_v61 = vadd.f32 %v1244_v16, %v1070_v21  ;;  %v879_v13 = vmul.f32 %v2772_v31, %v4013_v55  ;;  %v1119_v4 = vmul.f32 %v2784_v38, %v389_v30  ;;  %v4106_v10 = vmul.f32 %v2784_v38, %v390_v45 }
 0x179   : > { %v763_v18 = vrot.slane %v636_v36, 1  ;;  %v588_v57 = vadd.f32 %v556_v11, %v523_v52  ;;  %v764_v49 = vrot.slane %v637_v35, 1  ;;  %v1004_v56 = vrot.slane %v878_v15, 1 }
 0x17a   : > { %v1553_v48 = vadd.f32 %v1486_v46, %v1311_v61  ;;  %v1005_v3 = vrot.slane %v879_v13, 1  ;;  %v1245_v60 = vrot.slane %v1119_v4, 1  ;;  %v1246_v24 = vrot.slane %v4106_v10, 1 }
 0x17b   : > { %v1360_v42 = vmul.f32 %v2733_v5, %v3904_v14  ;;  %v765_v58 = vsel %vm687_vm2, %v763_v18, %v764_v49  ;;  %v1361_v29 = vmul.f32 %v2733_v5, %v3922_v23  ;;  %v1602_v25 = vmul.f32 %v2774_v32, %v3992_v34 }
 0x17c   : > { %v1794_v0 = vadd.f32 %v1727_v53, %v1553_v48  ;;  %v830_v28 = vadd.f32 %v765_v58, %v588_v57  ;;  %v1006_v17 = vsel %vm687_vm2, %v1004_v56, %v1005_v3  ;;  %v1247_v51 = vsel %vm687_vm2, %v1245_v60, %v1246_v24 }
 0x17d   : > { %v1487_v33 = vrot.slane %v1360_v42, 2  ;;  %v1488_v50 = vrot.slane %v1361_v29, 2  ;;  %v1603_v14 = vmul.f32 %v2774_v32, %v4013_v55  ;;  %v1728_v54 = vrot.slane %v1602_v25, 2 }
 0x17e   : > { %v2035_v47 = vadd.f32 %v1968_v19, %v1794_v0  ;;  %v2168_v27 = vmul.f32 %v4038_v7, %v4038_v7  ;;  %v1071_v40 = vadd.f32 %v1006_v17, %v830_v28  ;;  %v1843_v8 = vmul.f32 %v2786_v39, %v389_v30 }
 0x17f   : > { %v1844_v34 = vmul.f32 %v2786_v39, %v390_v45  ;;  %v2123_v59 = vsel %vm217_vm0, %v4038_v7, 0.0  ;;  %v1489_v9 = vsel %vm1411_vm3, %v1487_v33, %v1488_v50  ;;  %v1729_v62 = vrot.slane %v1603_v14, 2 }
 0x180   : > { %2067 = vst.msk [vmem:[%s2917_s14 + $0xe8] sm:$0xff] %vm217_vm0, %v2035_v47  ;;  %v427_v26 = vmul.f32 %v2760_v20, %v3922_v23  ;;  %v2124_v16 = vadd.f32 %v2123_v59, %v2122_v12  ;;  %v1312_v21 = vadd.f32 %v1247_v51, %v1071_v40  ;;  %v1969_v46 = vrot.slane %v1843_v8, 2 }
 0x181   : > { %v1970_v41 = vrot.slane %v1844_v34, 2  ;;  %v557_v30 = vmul.f32 %v2782_v37, %v390_v45  ;;  %v1730_v53 = vsel %vm1411_vm3, %v1728_v54, %v1729_v62  ;;  %v492_v7 = vmul.f32 %v2766_v22, %v4013_v55 }
 0x182   : > { %v638_v19 = vmul.f32 %v2729_v2, %v3960_v6  ;;  %v2226_v11 = vsel %vm217_vm0, %v2168_v27, 0.0  ;;  %v1554_v36 = vadd.f32 %v1489_v9, %v1312_v21  ;;  %v880_v23 = vmul.f32 %v2772_v31, %v4054_v63 }
 0x183   : > { %v1971_v20 = vsel %vm1411_vm3, %v1969_v46, %v1970_v41  ;;  %v524_v12 = vadd.f32 %v492_v7, %v427_v26  ;;  %v1121_v37 = vmul.f32 %v2784_v38, %v391_v1  ;;  %v1362_v45 = vmul.f32 %v2733_v5, %v3960_v6 }
 0x184   : > { %v766_v61 = vrot.slane %v638_v19, 1  ;;  %v2227_v22 = vadd.f32 %v2226_v11, %v4085_v44  ;;  %v1795_v55 = vadd.f32 %v1730_v53, %v1554_v36  ;;  %v1007_v2 = vrot.slane %v880_v23, 1 }
 0x185   : > { %v1604_v52 = vmul.f32 %v2774_v32, %v4054_v63  ;;  %v2169_v35 = vmul.f32 %v4075_v43, %v4075_v43  ;;  %v589_v15 = vadd.f32 %v557_v30, %v524_v12  ;;  %v1248_v18 = vrot.slane %v1121_v37, 1 }
 0x186   : > { %v767_v31 = vsel %vm687_vm2, %v764_v49, %v766_v61  ;;  %v2036_v13 = vadd.f32 %v1971_v20, %v1795_v55  ;;  %v1008_v38 = vsel %vm687_vm2, %v1005_v3, %v1007_v2  ;;  %v1490_v4 = vrot.slane %v1362_v45, 2 }
 0x187   : > { %v1845_v5 = vmul.f32 %v2786_v39, %v391_v1  ;;  %v2125_v6 = vsel %vm217_vm0, %v4075_v43, 0.0  ;;  %v831_v44 = vadd.f32 %v767_v31, %v589_v15  ;;  %v1249_v32 = vsel %vm687_vm2, %v1246_v24, %v1248_v18 }
 0x188   : > { %v2126_v10 = vadd.f32 %v2125_v6, %v2124_v16  ;;  %2068 = vst.msk [vmem:[%s2917_s14 + $0xf0] sm:$0xff] %vm217_vm0, %v2036_v13  ;;  %v1731_v63 = vrot.slane %v1604_v52, 2  ;;  %v2228_v48 = vsel %vm217_vm0, %v2169_v35, 0.0  ;;  %v2170_v57 = vmul.f32 %v2035_v47, %v2035_v47 }
 0x189   : > { %v1072_v49 = vadd.f32 %v1008_v38, %v831_v44  ;;  %v2229_v56 = vadd.f32 %v2228_v48, %v2227_v22  ;;  %v1491_v3 = vsel %vm1411_vm3, %v1488_v50, %v1490_v4  ;;  %v1972_v60 = vrot.slane %v1845_v5, 2 }
 0x18a   : > { %v2127_v39 = vsel %vm217_vm0, %v2035_v47, 0.0  ;;  %v1732_v0 = vsel %vm1411_vm3, %v1729_v62, %v1731_v63  ;;  %v2230_v58 = vsel %vm217_vm0, %v2170_v57, 0.0  ;;  %v2171_v24 = vmul.f32 %v2036_v13, %v2036_v13 }
 0x18b   : > { %v1313_v42 = vadd.f32 %v1249_v32, %v1072_v49  ;;  %v2128_v43 = vadd.f32 %v2127_v39, %v2126_v10  ;;  %v2231_v25 = vadd.f32 %v2230_v58, %v2229_v56  ;;  %v1973_v28 = vsel %vm1411_vm3, %v1970_v41, %v1972_v60 }
 0x18c   : > { %v2129_v17 = vsel %vm217_vm0, %v2036_v13, 0.0  ;;  %v2232_v50 = vsel %vm217_vm0, %v2171_v24, 0.0 }
 0x18d   : > { %v1555_v29 = vadd.f32 %v1491_v3, %v1313_v42  ;;  %v2130_v33 = vadd.f32 %v2129_v17, %v2128_v43  ;;  %v2233_v14 = vadd.f32 %v2232_v50, %v2231_v25 }
 0x18f   : > { %v1796_v51 = vadd.f32 %v1732_v0, %v1555_v29 }
 0x191   : > { %v2037_v47 = vadd.f32 %v1973_v28, %v1796_v51 }
 0x193   : > { %2069 = vst.msk [vmem:[%s2917_s14 + $0xf8] sm:$0xff] %vm217_vm0, %v2037_v47  ;;  %v2131_v54 = vsel %vm217_vm0, %v2037_v47, 0.0  ;;  %v2172_v27 = vmul.f32 %v2037_v47, %v2037_v47 }
 0x194   : > { %v2132_v40 = vadd.f32 %v2131_v54, %v2130_v33 }
 0x195   : > { %v2234_v8 = vsel %vm217_vm0, %v2172_v27, 0.0 }
 0x196   : > { %v2133_v34 = vrot.slane %v2132_v40, 4  ;;  %v2235_v59 = vadd.f32 %v2234_v8, %v2233_v14 }
 0x198   : > { %v2134_v9 = vadd.f32 %v2133_v34, %v2132_v40  ;;  %v2236_v62 = vrot.slane %v2235_v59, 4 }
 0x19a   : > { %v2135_v26 = vrot.slane %v2134_v9, 2  ;;  %v2237_v16 = vadd.f32 %v2236_v62, %v2235_v59 }
 0x19c   : > { %v2136_v21 = vadd.f32 %v2135_v26, %v2134_v9  ;;  %v2238_v46 = vrot.slane %v2237_v16, 2 }
 0x19e   : > { %v2137_v41 = vrot.slane %v2136_v21, 1  ;;  %v2239_v1 = vadd.f32 %v2238_v46, %v2237_v16 }
 0x1a0   : > { %v2138_v30 = vadd.f32 %v2137_v41, %v2136_v21  ;;  %v2240_v53 = vrot.slane %v2239_v1, 1 }
 0x1a2   : > { %2140 = vst.msk [vmem:[%s200_s28] sm:$0x1] %vm2139_vm4, %v2138_v30  ;;  %v2241_v7 = vadd.f32 %v2240_v53, %v2239_v1 }
 0x1a3   : > { %2473 = shalt.err (!%p2470_p3)
}
 0x1a4   : > { %2401 = dma.vmem_to_hbm [thread:$0]  (%p2606_p5), %s2267_s29, 16, %s2269_s7, %s2249_s19   ;;  %2242 = vst.msk [vmem:[%s206_s8] sm:$0x1] %vm2139_vm4, %v2241_v7 }
 0x1a5   : > { %s2253_s28 = scalar_lea.sflag [#allocation6], %s4170_s20  ;;  %s2488_s30 = sshra.s32 %s2282_s10, 4  ;;  %s2489_s30 = int_to_ptr.hbm [resolvable:$true] %s2488_s30 }
 0x1a6   : > { %s2490_s5 = scalar_lea.hbm %s2489_s30, 1  ;;  %s2494_s12 = scalar_lea.hbm %s4245_s4, 2 }
 0x1a7   : > { %p2491_p4 = scmp.ne.s32.totalorder %s2489_s30, %s2490_s5  ;;  %p2495_p9 = scmp.lt.s32.totalorder %s2489_s30, %s4245_s4 }
 0x1a8   : > { %p2496_p10 = scmp.lt.s32.totalorder %s2494_s12, %s2490_s5 }
 0x1a9   : > { %p2492_p7 = pnand %p2491_p4, %p2606_p5 }
 0x1aa   : > { %p2497_p11 = por %p2496_p10, %p2495_p9 }
 0x1ab   : > { %p2493_p8 = pneg %p2492_p7 }
 0x1ad   : > { %p2498_p12 = pnand %p2497_p11, %p2493_p8 }
 0x1af   : > { %2501 = shalt.err (!%p2498_p12)
}
 0x1b0   : > { %2402 = dma.vmem_to_hbm [thread:$0]  (%p2606_p5), %s2280_s9, 16, %s2282_s10, %s2253_s28  }
 0x1b1 PF: > { %p2412_p13 = scmp.ge.s32.totalorder %s2540_s18, 2  ;;  %s2301_s20 = sand.u32 1, %s2528_s15  }
 0x1b2   : > { %s2302_s29 = scalar_lea.sflag [#allocation4], %s2301_s20 }
 0x1b3   : > { %p2406_p0 = pnand %p2412_p13, %p2610_p6 }
 0x1b5   : > { %p2407_p1 = pneg %p2406_p0 }
 0x1b7   : > { %2519 = dma.done.wait (%p2407_p1), %s2302_s29, 16  }
 0x1b8   : > { %2521 = vsyncadd (%p2407_p1), %s2302_s29, 4294967280  ;;  %s2311_s7 = scalar_lea.sflag [#allocation6], %s2301_s20 }
 0x1b9   : > { %2523 = dma.done.wait (%p2407_p1), %s2311_s7, 16  }
 0x1ba   : > { %2525 = vsyncadd (%p2407_p1), %s2311_s7, 4294967280  ;;  %p18_p5 = scmp.ge.s32.totalorder %s2593_s21, 4   ;;  %s4248_s15 = smov %s2532_s16 }
 0x1bb   : > { %s4249_s16 = smov %s2536_s17  ;;  %s4250_s17 = smov %s2604_s24 }
 0x1bc   : > { %s4251_s18 = smov %s2593_s21  ;;  %20 = sbr.rel (!%p18_p5) target bundleno = 5 (0x5), region = 93 }
 0x1c1   :  { %2316 = vsyncpa [#allocation4], 1 }
 0x1c2   :  { %2318 = vsyncpa [#allocation4 + $0x1], 1 }
 0x1c3   :  { %2319 = vsyncpa [#allocation6], 1 }
 0x1c4   :  { %2321 = vsyncpa [#allocation6 + $0x1], 1 }

</bundles_post_ra>
